<compile_context>
chip_gen: v6e
topology: v6e:2x2x1
jax: 0.10.0
libtpu: 0.0.40
codegen_flags: <defaults>
</compile_context>

<pallas_src>
import functools
import math

import jax
import jax.numpy as jnp
from jax.experimental import pallas as pl
from jax.experimental.pallas import tpu as pltpu  # noqa: F401

LANE_PAD = 128  # lane-dense padded width for the logits output


# ----------------------------------------------------------------------------
# One fused kernel: BERT-style encoder layer (all columns at once) +
# sentence pooling + classification head.
# ----------------------------------------------------------------------------
def _citex_kernel(x_ref, mask_ref, num_ref,
                  wqkv_ref, wo_ref, w1_ref, w2_ref,
                  wc_ref, wf1_ref, wf2_ref, wout_ref,
                  bqkv_ref, dvecs_ref, b1_ref, hvecs_ref,
                  out_ref, *, B, T):
    TB, S, D = x_ref.shape            # TB = T * B
    H1 = wc_ref.shape[1]
    H2 = wf1_ref.shape[1]

    x = x_ref[...]                    # (TB, S, D) bf16
    mask = mask_ref[...]              # (TB, S)    f32  (1 = valid, 0 = pad)
    dvecs = dvecs_ref[...]            # (8, D) f32: bo, ln1g, ln1b, b2, ln2g, ln2b, 0, 0
    hvecs = hvecs_ref[...]            # (4, LANE_PAD) f32: bc, bf, b_out, 0

    # ---- fused QKV projection over all columns/tokens at once (M = TB*S) ----
    x2 = x.reshape(TB * S, D)
    qkv = (jnp.dot(x2, wqkv_ref[...], preferred_element_type=jnp.float32)
           + bqkv_ref[...])                                   # (TB*S, 3D) f32
    qkv3 = qkv.reshape(TB, S, 3 * D)
    q = qkv3[:, :, :D]
    k = qkv3[:, :, D:2 * D]
    v = qkv3[:, :, 2 * D:]

    # ---- self-attention batched over all (column, batch) pairs ----
    scores = jnp.einsum('bqd,bkd->bqk', q.astype(jnp.bfloat16),
                        k.astype(jnp.bfloat16),
                        preferred_element_type=jnp.float32)
    scores = scores * jnp.float32(1.0 / math.sqrt(D))
    scores = scores + (mask[:, None, :] - 1.0) * 1e9          # mask padded keys
    scores = scores - jnp.max(scores, axis=-1, keepdims=True)
    p = jnp.exp(scores)                                       # f32 elementwise
    attn = p * pl.reciprocal(jnp.sum(p, axis=-1, keepdims=True), approx=True)
    ctx = jnp.einsum('bqk,bkd->bqd', attn.astype(jnp.bfloat16),
                     v.astype(jnp.bfloat16),
                     preferred_element_type=jnp.float32)      # (TB, S, D) f32

    attn_out = (jnp.dot(ctx.reshape(TB * S, D).astype(jnp.bfloat16),
                        wo_ref[...], preferred_element_type=jnp.float32)
                + dvecs[0:1, :])                              # + bo

    def layernorm(t, g, b):
        mu = jnp.mean(t, axis=-1, keepdims=True)
        var = jnp.mean((t - mu) ** 2, axis=-1, keepdims=True)
        return (t - mu) * jax.lax.rsqrt(var + 1e-12) * g + b

    h = layernorm(x2.astype(jnp.float32) + attn_out,
                  dvecs[1:2, :], dvecs[2:3, :])               # (TB*S, D) f32

    # ---- FFN ----
    ffn = jax.nn.gelu(jnp.dot(h.astype(jnp.bfloat16), w1_ref[...],
                              preferred_element_type=jnp.float32)
                      + b1_ref[...], approximate=True)
    ffn = (jnp.dot(ffn.astype(jnp.bfloat16), w2_ref[...],
                   preferred_element_type=jnp.float32) + dvecs[3:4, :])
    enc = layernorm(h + ffn, dvecs[4:5, :], dvecs[5:6, :])    # (TB*S, D) f32

    # ---- sentence pooling + ff_combined, fused ----
    # Column t's sentence embedding is token t (word_embeddings[:, t, :]).
    # concat_t(sent_t) @ Wc == sum_t sent_t @ Wc[t*D:(t+1)*D]  (no concat).
    enc3 = enc.reshape(TB, S, D)
    h1 = jnp.zeros((B, H1), jnp.float32)
    for t in range(T):                                        # static unroll, T small
        sent_t = enc3[t * B:(t + 1) * B, t:t + 1, :].reshape(B, D)   # (B, D)
        h1 = h1 + jnp.dot(sent_t.astype(jnp.bfloat16),
                          wc_ref[t * D:(t + 1) * D, :],
                          preferred_element_type=jnp.float32)
    h1 = jnp.maximum(h1 + hvecs[0:1, :H1], 0.0)               # relu(ff_combined)
    # dropout (inference): identity

    # ff over concat([h1, numericals]); Wf split into (H1,H2) and (N,H2) halves
    h2 = jnp.maximum(
        jnp.dot(h1.astype(jnp.bfloat16), wf1_ref[...],
                preferred_element_type=jnp.float32)
        + jnp.dot(num_ref[...].astype(jnp.bfloat16), wf2_ref[...],
                  preferred_element_type=jnp.float32)
        + hvecs[1:2, :H2], 0.0)

    # out projection into a lane-dense (B, 128) slab; real classes are [:, :C]
    out_ref[...] = (jnp.dot(h2.astype(jnp.bfloat16), wout_ref[...],
                            preferred_element_type=jnp.float32)
                    + hvecs[2:3, :])


def run_citexformer_kernel(x, mask, numericals, p, B, T):
    kernel = functools.partial(_citex_kernel, B=B, T=T)
    # No grid: the whole (tiny) problem fits in VMEM; single invocation,
    # full arrays passed whole (no per-step pipeline overhead).
    return pl.pallas_call(
        kernel,
        out_shape=jax.ShapeDtypeStruct((B, LANE_PAD), jnp.float32),
    )(x, mask, numericals,
      p['wqkv'], p['wo'], p['w1'], p['w2'],
      p['wc'], p['wf1'], p['wf2'], p['wout'],
      p['bqkv'], p['dvecs'], p['b1'], p['hvecs'])


# ----------------------------------------------------------------------------
# Parameter init + full forward
# ----------------------------------------------------------------------------
def init_params(key, V, D, F, T, H1, N, H2, C):
    ks = jax.random.split(key, 16)

    def w(k, shape, scale=0.05):
        return (scale * jax.random.normal(k, shape)).astype(jnp.float32)

    wqkv = jnp.concatenate(
        [w(ks[1], (D, D)), w(ks[2], (D, D)), w(ks[3], (D, D))],
        axis=1).astype(jnp.bfloat16)                           # (D, 3D)

    # packed D-width vectors: bo, ln1 gamma/beta, b2, ln2 gamma/beta (+pad)
    dvecs = jnp.stack([
        jnp.zeros((D,)), jnp.ones((D,)), jnp.zeros((D,)),
        jnp.zeros((D,)), jnp.ones((D,)), jnp.zeros((D,)),
        jnp.zeros((D,)), jnp.zeros((D,)),
    ]).astype(jnp.float32)                                     # (8, D)

    # head biases packed + lane-padded: row0=bc, row1=bf, row2=b_out, row3=pad
    hvecs = jnp.zeros((4, LANE_PAD), jnp.float32)

    # output projection padded to 128 lanes (columns >= C are zero)
    wout = jnp.zeros((H2, LANE_PAD), jnp.float32)
    wout = wout.at[:, :C].set(w(ks[10], (H2, C)))

    return dict(
        emb=w(ks[0], (V, D)).astype(jnp.bfloat16),
        wqkv=wqkv,
        bqkv=jnp.zeros((1, 3 * D), jnp.float32),
        wo=w(ks[4], (D, D)).astype(jnp.bfloat16),
        dvecs=dvecs,
        w1=w(ks[5], (D, F)).astype(jnp.bfloat16),
        b1=jnp.zeros((1, F), jnp.float32),
        w2=w(ks[6], (F, D)).astype(jnp.bfloat16),
        # head (ff_combined, ff, out) — Linear weights stored as (in, out)
        wc=w(ks[7], (D * T, H1)).astype(jnp.bfloat16),
        wf1=w(ks[8], (H1, H2)).astype(jnp.bfloat16),
        wf2=w(ks[9], (N, H2)).astype(jnp.bfloat16),
        wout=wout.astype(jnp.bfloat16),
        hvecs=hvecs,
    )


@functools.partial(jax.jit, static_argnames=('num_classes',))
def citexformer_forward(input_ids, att_masks, numericals, params, num_classes):
    B, S, T = input_ids.shape
    # Layout glue on the tiny int arrays only (no HBM relayout of the embedded
    # float tensor): (B, S, T) -> (T*B, S), then embed directly in that layout.
    ids_tbs = jnp.transpose(input_ids, (2, 0, 1)).reshape(T * B, S)
    mask_tbs = jnp.transpose(att_masks, (2, 0, 1)).reshape(T * B, S)
    x = jnp.take(params['emb'], ids_tbs, axis=0)               # (T*B, S, D) bf16

    logits_pad = run_citexformer_kernel(
        x, mask_tbs.astype(jnp.float32), numericals.astype(jnp.float32),
        params, B, T)                                          # (B, 128)
    return logits_pad[:, :num_classes]                         # (B, C)


if __name__ == "__main__":
    B, S, T = 2, 8, 3          # batch, seq len, text_col_size
    D, F = 32, 64              # BERT hidden / intermediate dims (synthetic)
    V = 50                     # vocab
    H1, H2 = 32, 32            # ff_combined_hidden_dim, ff_hidden_dim
    N = 4                      # num_col_size
    C = 5                      # NUM_TARGET_CLS

    key = jax.random.PRNGKey(0)
    k_ids, k_num, k_par = jax.random.split(key, 3)

    input_ids = jax.random.randint(k_ids, (B, S, T), 0, V, dtype=jnp.int32)
    att_masks = jnp.ones((B, S, T), jnp.int32).at[:, S - 2:, :].set(0)
    numericals = jax.random.normal(k_num, (B, N), jnp.float32)

    params = init_params(k_par, V, D, F, T, H1, N, H2, C)

    logits = citexformer_forward(input_ids, att_masks, numericals, params, C)
    jax.block_until_ready(logits)
    assert logits.shape == (B, C) and logits.dtype == jnp.float32
    print("KERNEL_OK")
</pallas_src>

<mosaic_0001>
module attributes {stable_mosaic.version = 11 : i64} {
  func.func @_citex_kernel(%arg0: memref<6x8x32xbf16, #tpu.memory_space<vmem>>, %arg1: memref<6x8xf32, #tpu.memory_space<vmem>>, %arg2: memref<2x4xf32, #tpu.memory_space<vmem>>, %arg3: memref<32x96xbf16, #tpu.memory_space<vmem>>, %arg4: memref<32x32xbf16, #tpu.memory_space<vmem>>, %arg5: memref<32x64xbf16, #tpu.memory_space<vmem>>, %arg6: memref<64x32xbf16, #tpu.memory_space<vmem>>, %arg7: memref<96x32xbf16, #tpu.memory_space<vmem>>, %arg8: memref<32x32xbf16, #tpu.memory_space<vmem>>, %arg9: memref<4x32xbf16, #tpu.memory_space<vmem>>, %arg10: memref<32x128xbf16, #tpu.memory_space<vmem>>, %arg11: memref<1x96xf32, #tpu.memory_space<vmem>>, %arg12: memref<8x32xf32, #tpu.memory_space<vmem>>, %arg13: memref<1x64xf32, #tpu.memory_space<vmem>>, %arg14: memref<4x128xf32, #tpu.memory_space<vmem>>, %arg15: memref<2x128xf32, #tpu.memory_space<vmem>>) attributes {dimension_semantics = [], scalar_prefetch = 0 : i64, scratch_operands = 0 : i64, tpu.core_type = #tpu.core_type<tc>} {
    %c0 = arith.constant 0 : index
    %c0_0 = arith.constant 0 : index
    %c0_1 = arith.constant 0 : index
    %0 = vector.load %arg0[%c0, %c0_0, %c0_1] : memref<6x8x32xbf16, #tpu.memory_space<vmem>>, vector<6x8x32xbf16>
    %c0_2 = arith.constant 0 : index
    %c0_3 = arith.constant 0 : index
    %1 = vector.load %arg1[%c0_2, %c0_3] : memref<6x8xf32, #tpu.memory_space<vmem>>, vector<6x8xf32>
    %c0_4 = arith.constant 0 : index
    %c0_5 = arith.constant 0 : index
    %2 = vector.load %arg12[%c0_4, %c0_5] : memref<8x32xf32, #tpu.memory_space<vmem>>, vector<8x32xf32>
    %c0_6 = arith.constant 0 : index
    %c0_7 = arith.constant 0 : index
    %3 = vector.load %arg14[%c0_6, %c0_7] : memref<4x128xf32, #tpu.memory_space<vmem>>, vector<4x128xf32>
    %4 = vector.shape_cast %0 : vector<6x8x32xbf16> to vector<48x32xbf16>
    %c0_8 = arith.constant 0 : index
    %c0_9 = arith.constant 0 : index
    %5 = vector.load %arg3[%c0_8, %c0_9] : memref<32x96xbf16, #tpu.memory_space<vmem>>, vector<32x96xbf16>
    %cst = arith.constant dense<0.000000e+00> : vector<48x96xf32>
    %6 = tpu.matmul %4, %5, %cst {dimension_numbers = #tpu.dot_dimension_numbers<[1], [0], [0], [1], [0, 0, 1, 1], [], []>} : vector<48x32xbf16>, vector<32x96xbf16>, vector<48x96xf32> -> vector<48x96xf32>
    %c0_10 = arith.constant 0 : index
    %c0_11 = arith.constant 0 : index
    %7 = vector.load %arg11[%c0_10, %c0_11] : memref<1x96xf32, #tpu.memory_space<vmem>>, vector<1x96xf32>
    %8 = vector.broadcast %7 : vector<1x96xf32> to vector<48x96xf32>
    %9 = arith.addf %6, %8 : vector<48x96xf32>
    %10 = vector.shape_cast %9 : vector<48x96xf32> to vector<6x8x96xf32>
    %11 = vector.extract_strided_slice %10 {offsets = [0, 0, 0], sizes = [6, 8, 32], strides = [1, 1, 1]} : vector<6x8x96xf32> to vector<6x8x32xf32>
    %12 = vector.extract_strided_slice %10 {offsets = [0, 0, 32], sizes = [6, 8, 32], strides = [1, 1, 1]} : vector<6x8x96xf32> to vector<6x8x32xf32>
    %13 = vector.extract_strided_slice %10 {offsets = [0, 0, 64], sizes = [6, 8, 32], strides = [1, 1, 1]} : vector<6x8x96xf32> to vector<6x8x32xf32>
    %14 = arith.truncf %11 : vector<6x8x32xf32> to vector<6x8x32xbf16>
    %15 = arith.truncf %12 : vector<6x8x32xf32> to vector<6x8x32xbf16>
    "tpu.trace_start"() <{level = 10 : i32, message = "bqd,bkd->bqk"}> : () -> ()
    %cst_12 = arith.constant dense<0.000000e+00> : vector<6x8x8xf32>
    %16 = tpu.matmul %14, %15, %cst_12 {dimension_numbers = #tpu.dot_dimension_numbers<[2], [2], [1], [1], [0, 0, 0, 1, 1, 1], [0], [0]>} : vector<6x8x32xbf16>, vector<6x8x32xbf16>, vector<6x8x8xf32> -> vector<6x8x8xf32>
    "tpu.trace_stop"() : () -> ()
    %cst_13 = arith.constant 0.176776692 : f32
    %17 = vector.broadcast %cst_13 : f32 to vector<6x8x8xf32>
    %18 = arith.mulf %16, %17 : vector<6x8x8xf32>
    %19 = vector.shape_cast %1 : vector<6x8xf32> to vector<6x1x8xf32>
    %cst_14 = arith.constant 1.000000e+00 : f32
    %20 = vector.broadcast %cst_14 : f32 to vector<6x1x8xf32>
    %21 = arith.subf %19, %20 : vector<6x1x8xf32>
    %cst_15 = arith.constant 1.000000e+09 : f32
    %22 = vector.broadcast %cst_15 : f32 to vector<6x1x8xf32>
    %23 = arith.mulf %21, %22 : vector<6x1x8xf32>
    %24 = vector.broadcast %23 : vector<6x1x8xf32> to vector<6x8x8xf32>
    %25 = arith.addf %18, %24 : vector<6x8x8xf32>
    %cst_16 = arith.constant dense<0xFF800000> : vector<6x8xf32>
    %26 = vector.multi_reduction <maximumf>, %25, %cst_16 [2] : vector<6x8x8xf32> to vector<6x8xf32>
    %27 = vector.shape_cast %26 : vector<6x8xf32> to vector<6x8x1xf32>
    %28 = vector.broadcast %27 : vector<6x8x1xf32> to vector<6x8x8xf32>
    %29 = arith.subf %25, %28 : vector<6x8x8xf32>
    %30 = math.exp %29 : vector<6x8x8xf32>
    %cst_17 = arith.constant dense<0.000000e+00> : vector<6x8xf32>
    %31 = vector.multi_reduction <add>, %30, %cst_17 [2] : vector<6x8x8xf32> to vector<6x8xf32>
    %32 = vector.shape_cast %31 : vector<6x8xf32> to vector<6x8x1xf32>
    %33 = tpu.reciprocal %32 {approx = true} : vector<6x8x1xf32> -> vector<6x8x1xf32>
    %34 = vector.broadcast %33 : vector<6x8x1xf32> to vector<6x8x8xf32>
    %35 = arith.mulf %30, %34 : vector<6x8x8xf32>
    %36 = arith.truncf %35 : vector<6x8x8xf32> to vector<6x8x8xbf16>
    %37 = arith.truncf %13 : vector<6x8x32xf32> to vector<6x8x32xbf16>
    "tpu.trace_start"() <{level = 10 : i32, message = "bqk,bkd->bqd"}> : () -> ()
    %cst_18 = arith.constant dense<0.000000e+00> : vector<6x8x32xf32>
    %38 = tpu.matmul %36, %37, %cst_18 {dimension_numbers = #tpu.dot_dimension_numbers<[2], [1], [1], [2], [0, 0, 0, 1, 1, 2], [0], [0]>} : vector<6x8x8xbf16>, vector<6x8x32xbf16>, vector<6x8x32xf32> -> vector<6x8x32xf32>
    "tpu.trace_stop"() : () -> ()
    %39 = vector.shape_cast %38 : vector<6x8x32xf32> to vector<48x32xf32>
    %40 = arith.truncf %39 : vector<48x32xf32> to vector<48x32xbf16>
    %c0_19 = arith.constant 0 : index
    %c0_20 = arith.constant 0 : index
    %41 = vector.load %arg4[%c0_19, %c0_20] : memref<32x32xbf16, #tpu.memory_space<vmem>>, vector<32x32xbf16>
    %cst_21 = arith.constant dense<0.000000e+00> : vector<48x32xf32>
    %42 = tpu.matmul %40, %41, %cst_21 {dimension_numbers = #tpu.dot_dimension_numbers<[1], [0], [0], [1], [0, 0, 1, 1], [], []>} : vector<48x32xbf16>, vector<32x32xbf16>, vector<48x32xf32> -> vector<48x32xf32>
    %43 = vector.extract_strided_slice %2 {offsets = [0, 0], sizes = [1, 32], strides = [1, 1]} : vector<8x32xf32> to vector<1x32xf32>
    %44 = vector.broadcast %43 : vector<1x32xf32> to vector<48x32xf32>
    %45 = arith.addf %42, %44 : vector<48x32xf32>
    %46 = arith.extf %4 : vector<48x32xbf16> to vector<48x32xf32>
    %47 = arith.addf %46, %45 : vector<48x32xf32>
    %48 = vector.extract_strided_slice %2 {offsets = [1, 0], sizes = [1, 32], strides = [1, 1]} : vector<8x32xf32> to vector<1x32xf32>
    %49 = vector.extract_strided_slice %2 {offsets = [2, 0], sizes = [1, 32], strides = [1, 1]} : vector<8x32xf32> to vector<1x32xf32>
    %cst_22 = arith.constant dense<0.000000e+00> : vector<48xf32>
    %50 = vector.multi_reduction <add>, %47, %cst_22 [1] : vector<48x32xf32> to vector<48xf32>
    %51 = vector.shape_cast %50 : vector<48xf32> to vector<48x1xf32>
    %cst_23 = arith.constant 3.200000e+01 : f32
    %52 = vector.broadcast %cst_23 : f32 to vector<48x1xf32>
    %53 = arith.divf %51, %52 : vector<48x1xf32>
    %54 = vector.broadcast %53 : vector<48x1xf32> to vector<48x32xf32>
    %55 = arith.subf %47, %54 : vector<48x32xf32>
    %56 = arith.mulf %55, %55 : vector<48x32xf32>
    %cst_24 = arith.constant dense<0.000000e+00> : vector<48xf32>
    %57 = vector.multi_reduction <add>, %56, %cst_24 [1] : vector<48x32xf32> to vector<48xf32>
    %58 = vector.shape_cast %57 : vector<48xf32> to vector<48x1xf32>
    %cst_25 = arith.constant 3.200000e+01 : f32
    %59 = vector.broadcast %cst_25 : f32 to vector<48x1xf32>
    %60 = arith.divf %58, %59 : vector<48x1xf32>
    %61 = vector.broadcast %53 : vector<48x1xf32> to vector<48x32xf32>
    %62 = arith.subf %47, %61 : vector<48x32xf32>
    %cst_26 = arith.constant 9.99999996E-13 : f32
    %63 = vector.broadcast %cst_26 : f32 to vector<48x1xf32>
    %64 = arith.addf %60, %63 : vector<48x1xf32>
    %65 = math.rsqrt %64 : vector<48x1xf32>
    %66 = vector.broadcast %65 : vector<48x1xf32> to vector<48x32xf32>
    %67 = arith.mulf %62, %66 : vector<48x32xf32>
    %68 = vector.broadcast %48 : vector<1x32xf32> to vector<48x32xf32>
    %69 = arith.mulf %67, %68 : vector<48x32xf32>
    %70 = vector.broadcast %49 : vector<1x32xf32> to vector<48x32xf32>
    %71 = arith.addf %69, %70 : vector<48x32xf32>
    %72 = arith.truncf %71 : vector<48x32xf32> to vector<48x32xbf16>
    %c0_27 = arith.constant 0 : index
    %c0_28 = arith.constant 0 : index
    %73 = vector.load %arg5[%c0_27, %c0_28] : memref<32x64xbf16, #tpu.memory_space<vmem>>, vector<32x64xbf16>
    %cst_29 = arith.constant dense<0.000000e+00> : vector<48x64xf32>
    %74 = tpu.matmul %72, %73, %cst_29 {dimension_numbers = #tpu.dot_dimension_numbers<[1], [0], [0], [1], [0, 0, 1, 1], [], []>} : vector<48x32xbf16>, vector<32x64xbf16>, vector<48x64xf32> -> vector<48x64xf32>
    %c0_30 = arith.constant 0 : index
    %c0_31 = arith.constant 0 : index
    %75 = vector.load %arg13[%c0_30, %c0_31] : memref<1x64xf32, #tpu.memory_space<vmem>>, vector<1x64xf32>
    %76 = vector.broadcast %75 : vector<1x64xf32> to vector<48x64xf32>
    %77 = arith.addf %74, %76 : vector<48x64xf32>
    %78 = arith.mulf %77, %77 : vector<48x64xf32>
    %79 = arith.mulf %77, %78 : vector<48x64xf32>
    %cst_32 = arith.constant 4.471500e-02 : f32
    %80 = vector.broadcast %cst_32 : f32 to vector<48x64xf32>
    %81 = arith.mulf %80, %79 : vector<48x64xf32>
    %82 = arith.addf %77, %81 : vector<48x64xf32>
    %cst_33 = arith.constant 0.797884583 : f32
    %83 = vector.broadcast %cst_33 : f32 to vector<48x64xf32>
    %84 = arith.mulf %83, %82 : vector<48x64xf32>
    %85 = math.tanh %84 : vector<48x64xf32>
    %cst_34 = arith.constant 1.000000e+00 : f32
    %86 = vector.broadcast %cst_34 : f32 to vector<48x64xf32>
    %87 = arith.addf %86, %85 : vector<48x64xf32>
    %cst_35 = arith.constant 5.000000e-01 : f32
    %88 = vector.broadcast %cst_35 : f32 to vector<48x64xf32>
    %89 = arith.mulf %88, %87 : vector<48x64xf32>
    %90 = arith.mulf %77, %89 : vector<48x64xf32>
    %91 = arith.truncf %90 : vector<48x64xf32> to vector<48x64xbf16>
    %c0_36 = arith.constant 0 : index
    %c0_37 = arith.constant 0 : index
    %92 = vector.load %arg6[%c0_36, %c0_37] : memref<64x32xbf16, #tpu.memory_space<vmem>>, vector<64x32xbf16>
    %cst_38 = arith.constant dense<0.000000e+00> : vector<48x32xf32>
    %93 = tpu.matmul %91, %92, %cst_38 {dimension_numbers = #tpu.dot_dimension_numbers<[1], [0], [0], [1], [0, 0, 1, 1], [], []>} : vector<48x64xbf16>, vector<64x32xbf16>, vector<48x32xf32> -> vector<48x32xf32>
    %94 = vector.extract_strided_slice %2 {offsets = [3, 0], sizes = [1, 32], strides = [1, 1]} : vector<8x32xf32> to vector<1x32xf32>
    %95 = vector.broadcast %94 : vector<1x32xf32> to vector<48x32xf32>
    %96 = arith.addf %93, %95 : vector<48x32xf32>
    %97 = arith.addf %71, %96 : vector<48x32xf32>
    %98 = vector.extract_strided_slice %2 {offsets = [4, 0], sizes = [1, 32], strides = [1, 1]} : vector<8x32xf32> to vector<1x32xf32>
    %99 = vector.extract_strided_slice %2 {offsets = [5, 0], sizes = [1, 32], strides = [1, 1]} : vector<8x32xf32> to vector<1x32xf32>
    %cst_39 = arith.constant dense<0.000000e+00> : vector<48xf32>
    %100 = vector.multi_reduction <add>, %97, %cst_39 [1] : vector<48x32xf32> to vector<48xf32>
    %101 = vector.shape_cast %100 : vector<48xf32> to vector<48x1xf32>
    %cst_40 = arith.constant 3.200000e+01 : f32
    %102 = vector.broadcast %cst_40 : f32 to vector<48x1xf32>
    %103 = arith.divf %101, %102 : vector<48x1xf32>
    %104 = vector.broadcast %103 : vector<48x1xf32> to vector<48x32xf32>
    %105 = arith.subf %97, %104 : vector<48x32xf32>
    %106 = arith.mulf %105, %105 : vector<48x32xf32>
    %cst_41 = arith.constant dense<0.000000e+00> : vector<48xf32>
    %107 = vector.multi_reduction <add>, %106, %cst_41 [1] : vector<48x32xf32> to vector<48xf32>
    %108 = vector.shape_cast %107 : vector<48xf32> to vector<48x1xf32>
    %cst_42 = arith.constant 3.200000e+01 : f32
    %109 = vector.broadcast %cst_42 : f32 to vector<48x1xf32>
    %110 = arith.divf %108, %109 : vector<48x1xf32>
    %111 = vector.broadcast %103 : vector<48x1xf32> to vector<48x32xf32>
    %112 = arith.subf %97, %111 : vector<48x32xf32>
    %cst_43 = arith.constant 9.99999996E-13 : f32
    %113 = vector.broadcast %cst_43 : f32 to vector<48x1xf32>
    %114 = arith.addf %110, %113 : vector<48x1xf32>
    %115 = math.rsqrt %114 : vector<48x1xf32>
    %116 = vector.broadcast %115 : vector<48x1xf32> to vector<48x32xf32>
    %117 = arith.mulf %112, %116 : vector<48x32xf32>
    %118 = vector.broadcast %98 : vector<1x32xf32> to vector<48x32xf32>
    %119 = arith.mulf %117, %118 : vector<48x32xf32>
    %120 = vector.broadcast %99 : vector<1x32xf32> to vector<48x32xf32>
    %121 = arith.addf %119, %120 : vector<48x32xf32>
    %122 = vector.shape_cast %121 : vector<48x32xf32> to vector<6x8x32xf32>
    %cst_44 = arith.constant 0.000000e+00 : f32
    %123 = vector.broadcast %cst_44 : f32 to vector<2x32xf32>
    %124 = vector.extract_strided_slice %122 {offsets = [0, 0, 0], sizes = [2, 1, 32], strides = [1, 1, 1]} : vector<6x8x32xf32> to vector<2x1x32xf32>
    %125 = vector.shape_cast %124 : vector<2x1x32xf32> to vector<2x32xf32>
    %126 = arith.truncf %125 : vector<2x32xf32> to vector<2x32xbf16>
    %c0_45 = arith.constant 0 : index
    %c0_46 = arith.constant 0 : index
    %127 = vector.load %arg7[%c0_45, %c0_46] : memref<96x32xbf16, #tpu.memory_space<vmem>>, vector<32x32xbf16>
    %cst_47 = arith.constant dense<0.000000e+00> : vector<2x32xf32>
    %128 = tpu.matmul %126, %127, %cst_47 {dimension_numbers = #tpu.dot_dimension_numbers<[1], [0], [0], [1], [0, 0, 1, 1], [], []>} : vector<2x32xbf16>, vector<32x32xbf16>, vector<2x32xf32> -> vector<2x32xf32>
    %129 = arith.addf %123, %128 : vector<2x32xf32>
    %130 = vector.extract_strided_slice %122 {offsets = [2, 1, 0], sizes = [2, 1, 32], strides = [1, 1, 1]} : vector<6x8x32xf32> to vector<2x1x32xf32>
    %131 = vector.shape_cast %130 : vector<2x1x32xf32> to vector<2x32xf32>
    %132 = arith.truncf %131 : vector<2x32xf32> to vector<2x32xbf16>
    %c32 = arith.constant 32 : index
    %c0_48 = arith.constant 0 : index
    %133 = vector.load %arg7[%c32, %c0_48] : memref<96x32xbf16, #tpu.memory_space<vmem>>, vector<32x32xbf16>
    %cst_49 = arith.constant dense<0.000000e+00> : vector<2x32xf32>
    %134 = tpu.matmul %132, %133, %cst_49 {dimension_numbers = #tpu.dot_dimension_numbers<[1], [0], [0], [1], [0, 0, 1, 1], [], []>} : vector<2x32xbf16>, vector<32x32xbf16>, vector<2x32xf32> -> vector<2x32xf32>
    %135 = arith.addf %129, %134 : vector<2x32xf32>
    %136 = vector.extract_strided_slice %122 {offsets = [4, 2, 0], sizes = [2, 1, 32], strides = [1, 1, 1]} : vector<6x8x32xf32> to vector<2x1x32xf32>
    %137 = vector.shape_cast %136 : vector<2x1x32xf32> to vector<2x32xf32>
    %138 = arith.truncf %137 : vector<2x32xf32> to vector<2x32xbf16>
    %c64 = arith.constant 64 : index
    %c0_50 = arith.constant 0 : index
    %139 = vector.load %arg7[%c64, %c0_50] : memref<96x32xbf16, #tpu.memory_space<vmem>>, vector<32x32xbf16>
    %cst_51 = arith.constant dense<0.000000e+00> : vector<2x32xf32>
    %140 = tpu.matmul %138, %139, %cst_51 {dimension_numbers = #tpu.dot_dimension_numbers<[1], [0], [0], [1], [0, 0, 1, 1], [], []>} : vector<2x32xbf16>, vector<32x32xbf16>, vector<2x32xf32> -> vector<2x32xf32>
    %141 = arith.addf %135, %140 : vector<2x32xf32>
    %142 = vector.extract_strided_slice %3 {offsets = [0, 0], sizes = [1, 32], strides = [1, 1]} : vector<4x128xf32> to vector<1x32xf32>
    %143 = vector.broadcast %142 : vector<1x32xf32> to vector<2x32xf32>
    %144 = arith.addf %141, %143 : vector<2x32xf32>
    %cst_52 = arith.constant 0.000000e+00 : f32
    %145 = vector.broadcast %cst_52 : f32 to vector<2x32xf32>
    %146 = arith.maximumf %144, %145 : vector<2x32xf32>
    %147 = arith.truncf %146 : vector<2x32xf32> to vector<2x32xbf16>
    %c0_53 = arith.constant 0 : index
    %c0_54 = arith.constant 0 : index
    %148 = vector.load %arg8[%c0_53, %c0_54] : memref<32x32xbf16, #tpu.memory_space<vmem>>, vector<32x32xbf16>
    %cst_55 = arith.constant dense<0.000000e+00> : vector<2x32xf32>
    %149 = tpu.matmul %147, %148, %cst_55 {dimension_numbers = #tpu.dot_dimension_numbers<[1], [0], [0], [1], [0, 0, 1, 1], [], []>} : vector<2x32xbf16>, vector<32x32xbf16>, vector<2x32xf32> -> vector<2x32xf32>
    %c0_56 = arith.constant 0 : index
    %c0_57 = arith.constant 0 : index
    %150 = vector.load %arg2[%c0_56, %c0_57] : memref<2x4xf32, #tpu.memory_space<vmem>>, vector<2x4xf32>
    %151 = arith.truncf %150 : vector<2x4xf32> to vector<2x4xbf16>
    %c0_58 = arith.constant 0 : index
    %c0_59 = arith.constant 0 : index
    %152 = vector.load %arg9[%c0_58, %c0_59] : memref<4x32xbf16, #tpu.memory_space<vmem>>, vector<4x32xbf16>
    %cst_60 = arith.constant dense<0.000000e+00> : vector<2x32xf32>
    %153 = tpu.matmul %151, %152, %cst_60 {dimension_numbers = #tpu.dot_dimension_numbers<[1], [0], [0], [1], [0, 0, 1, 1], [], []>} : vector<2x4xbf16>, vector<4x32xbf16>, vector<2x32xf32> -> vector<2x32xf32>
    %154 = arith.addf %149, %153 : vector<2x32xf32>
    %155 = vector.extract_strided_slice %3 {offsets = [1, 0], sizes = [1, 32], strides = [1, 1]} : vector<4x128xf32> to vector<1x32xf32>
    %156 = vector.broadcast %155 : vector<1x32xf32> to vector<2x32xf32>
    %157 = arith.addf %154, %156 : vector<2x32xf32>
    %cst_61 = arith.constant 0.000000e+00 : f32
    %158 = vector.broadcast %cst_61 : f32 to vector<2x32xf32>
    %159 = arith.maximumf %157, %158 : vector<2x32xf32>
    %160 = arith.truncf %159 : vector<2x32xf32> to vector<2x32xbf16>
    %c0_62 = arith.constant 0 : index
    %c0_63 = arith.constant 0 : index
    %161 = vector.load %arg10[%c0_62, %c0_63] : memref<32x128xbf16, #tpu.memory_space<vmem>>, vector<32x128xbf16>
    %cst_64 = arith.constant dense<0.000000e+00> : vector<2x128xf32>
    %162 = tpu.matmul %160, %161, %cst_64 {dimension_numbers = #tpu.dot_dimension_numbers<[1], [0], [0], [1], [0, 0, 1, 1], [], []>} : vector<2x32xbf16>, vector<32x128xbf16>, vector<2x128xf32> -> vector<2x128xf32>
    %163 = vector.extract_strided_slice %3 {offsets = [2, 0], sizes = [1, 128], strides = [1, 1]} : vector<4x128xf32> to vector<1x128xf32>
    %164 = vector.broadcast %163 : vector<1x128xf32> to vector<2x128xf32>
    %165 = arith.addf %162, %164 : vector<2x128xf32>
    %c0_65 = arith.constant 0 : index
    %c0_66 = arith.constant 0 : index
    %166 = vector.load %arg15[%c0_65, %c0_66] : memref<2x128xf32, #tpu.memory_space<vmem>>, vector<2x128xf32>
    tpu.vector_store %arg15[%c0_65, %c0_66], %165 {strides = array<i32>} : memref<2x128xf32, #tpu.memory_space<vmem>>, vector<2x128xf32>,
    return
  }
}

</mosaic_0001>

<bundles_post_ra>
// kernel: citexformer_forward.1
= control target key start
LH: loop header
LB: loop body
LE: loop exit
PB: predicated region body
PF: predicated region fallthrough
CT: control target
= control target key end

     0   :  { %v2332_v1 = vmov 0.0   ;;  %vm2333_vm0 = vmmov 0   ;;  %vm99_vm1 = vcmask 261120   ;;  %s2832_s0 = inlined_call_operand.vmem [shape: bf16[6,8,32], index: 0, kind: input, shape index: {}]   ;;  %s2833_s1 = inlined_call_operand.vmem [shape: f32[6,8], index: 1, kind: input, shape index: {}]   ;;  %s2834_s2 = inlined_call_operand.vmem [shape: f32[2,4], index: 2, kind: input, shape index: {}]   ;;  %s2835_s3 = inlined_call_operand.vmem [shape: bf16[32,96], index: 3, kind: input, shape index: {}]   ;;  %s2836_s4 = inlined_call_operand.vmem [shape: bf16[32,32], index: 4, kind: input, shape index: {}]   ;;  %s2837_s5 = inlined_call_operand.vmem [shape: bf16[32,64], index: 5, kind: input, shape index: {}]   ;;  %s2838_s6 = inlined_call_operand.vmem [shape: bf16[64,32], index: 6, kind: input, shape index: {}]   ;;  %s2839_s7 = inlined_call_operand.vmem [shape: bf16[96,32], index: 7, kind: input, shape index: {}]   ;;  %s2840_s8 = inlined_call_operand.vmem [shape: bf16[32,32], index: 8, kind: input, shape index: {}]   ;;  %s2841_s9 = inlined_call_operand.vmem [shape: bf16[4,32], index: 9, kind: input, shape index: {}]   ;;  %s2842_s10 = inlined_call_operand.vmem [shape: bf16[32,128], index: 10, kind: input, shape index: {}]   ;;  %s2843_s11 = inlined_call_operand.vmem [shape: f32[1,96], index: 11, kind: input, shape index: {}]   ;;  %s2844_s12 = inlined_call_operand.vmem [shape: f32[8,32], index: 12, kind: input, shape index: {}]   ;;  %s2845_s13 = inlined_call_operand.vmem [shape: f32[1,64], index: 13, kind: input, shape index: {}]   ;;  %s2846_s14 = inlined_call_operand.vmem [shape: f32[4,128], index: 14, kind: input, shape index: {}]   ;;  %s2847_s15 = inlined_call_operand.hbm [shape: f32[2,128], index: 15, kind: output, shape index: {}]  }
   0x1   :  { %v2223_v0 = vld [vmem:[%s2835_s3 + $0x8] sm:$0xff]   ;;  %2031 = vmatprep.subr.bf16.mxu0 %v2332_v1  ;;  %2047 = vmatprep.subr.bf16.mxu1 %v2332_v1  ;;  %v2224_v2 = vld [vmem:[%s2835_s3] sm:$0xff]  }
   0x2   :  { %2032 = vmatpush3.bf16.msra.mxu0 %v2223_v0  ;;  %2035 = vmatprep.mubr.msk.bf16.mxu0 %vm2333_vm0, %v2332_v1  ;;  %v2431_v3 = vld [vmem:[%s2832_s0] sm:$0xff]   ;;  %v2440_v4 = vld [vmem:[%s2832_s0 + $0x8] sm:$0xff]  }
   0x3   :  { %2033 = vmatprep.subr.bf16.mxu0 %v2332_v1  ;;  %2049 = vmatprep.mubr.msk.bf16.mxu1 %vm2333_vm0, %v2332_v1 }
   0x6   :  { %2034 = vmatpush3.bf16.msra.mxu0 %v2224_v2 }
   0x7   :  { %2065 = vmatprep.subr.bf16.mxu0 %v2332_v1 }
   0x9   :  { %2036 = vmatmul.mubr.msk.bf16.vlgmr.msra.gmra.mxu0 %vm99_vm1, %v2431_v3 }
   0xa   :  { %2039 = vmatprep.mubr.msk.bf16.mxu0 %vm2333_vm0, %v2332_v1 }
   0xb   :  { %20 = vsyncpa [#allocation3], 0  ;;  %v2453_v5 = vld [vmem:[%s2832_s0 + $0x10] sm:$0xff]   ;;  %v1907_v6 = vld [vmem:[%s2843_s11] ss:$0 sm:$0xff]  ;;  %s2334_s29 = smov 96   ;;  %v477_v45 = vlaneseq }
   0xc   :  { %v2335_v43 = vmov 1966171168   ;;  %v58_v49 = vld [vmem:[%s2833_s1] sm:$0x3f]  ;;  %vm580_vm2 = vcmask 64512   ;;  %s2336_s1 = smov 64  }
   0xd   :  { %v475_v44 = vunpack.c.l.s4 %v2335_v43  ;;  %v2516_v47 = vshrl.u32 %v477_v45, 7  ;;  %v473_v57 = vcombine.high %v58_v49, %v58_v49  ;;  %vm658_vm3 = vcmask 1043456   ;;  %s2337_s28 = smov [#allocation2]  }
   0xe   :  { %vm1327_vm4 = vcmask 523264   ;;  %vm1515_vm5 = vcmask 1041409   ;;  %vm1723_vm6 = vcmask 1041408   ;;  %vm1719_vm7 = vcmask 31744  }
   0xf   :  { %v476_v46 = vunpack.c.0.s8 %v475_v44  ;;  %v2523_v55 = vsub.s32 0, %v2516_v47 }
  0x11   :  { %2040 = vmatmul.mubr.msk.bf16.gmra.mxu0 %vm99_vm1, %v2440_v4  ;;  %v479_v48 = vsub.s32 %v476_v46, %v2516_v47 }
  0x12   :  { %2043 = vmatprep.mubr.msk.bf16.mxu0 %vm2333_vm0, %v2332_v1 }
  0x13   :  { %v480_v50 = vrot.slane %v58_v49, %v479_v48  ;;  %v487_v62 = vrot.slane %v473_v57, %v479_v48 }
  0x15   :  { %v496_v51 = vrot.slane %v480_v50, %v479_v48  ;;  %v488_v53 = vcombine.high %v480_v50, %v480_v50 }
  0x17   :  { %v1922_v52 = vadd.f32 -1.0, %v496_v51  ;;  %v510_v56 = vrot.slane %v488_v53, %v479_v48 }
  0x19   :  { %2044 = vmatmul.mubr.msk.bf16.gmra.mxu0 %vm99_vm1, %v2453_v5  ;;  %v532_v54 = vmul.f32 1e+09, %v1922_v52  ;;  %v1923_v59 = vadd.f32 -1.0, %v510_v56 }
  0x1a   :  { %2067 = vmatprep.mubr.msk.bf16.mxu0 %vm2333_vm0, %v2332_v1 }
  0x1b   :  { %v547_v58 = vrot.slane %v532_v54, %v2523_v55  ;;  %v533_v2 = vmul.f32 1e+09, %v1923_v59 }
  0xc9   :  { %v143_v7 = vpop.f32.mrf.mxu0 }
  0xca   :  { %v144_v8 = vadd.f32 %v1907_v6, %v143_v7 }
  0xcb   :  { %v2037_v9 = vpop.f32.mrf.mxu0 }
  0xcc   :  { %v2462_v10 = vpack.c.bf16 %v144_v8, %v144_v8  ;;  %v519_v9 = vcombine.high %v510_v56, %v510_v56 }
  0xcd   :  { %v146_v11 = vpop.f32.mrf.mxu0 }
  0xce   :  { %v147_v12 = vadd.f32 %v1907_v6, %v146_v11  ;;  %173 = vrot.lane.b32.xlu0 %v2462_v10, %s2334_s29  ;;  %v489_v11 = vcombine.high %v487_v62, %v487_v62 }
  0xcf   :  { %v2038_v13 = vpop.f32.mrf.mxu0 }
  0xd0   :  { %v2465_v14 = vpack.c.bf16 %v147_v12, %v147_v12  ;;  %v551_v13 = vrot.slane %v533_v2, %v2523_v55 }
  0xd1   :  { %v151_v15 = vpop.f32.mrf.mxu0 }
  0xd2   :  { %v152_v16 = vadd.f32 %v1907_v6, %v151_v15  ;;  %222 = vrot.lane.b32.xlu0 %v2465_v14, %s2334_s29 }
  0xd3   :  { %v2041_v17 = vpop.f32.mrf.mxu0 }
  0xd4   :  { %v2468_v18 = vpack.c.bf16 %v152_v16, %v152_v16 }
  0xd5   :  { %v154_v19 = vpop.f32.mrf.mxu0 }
  0xd6   :  { %v155_v20 = vadd.f32 %v1907_v6, %v154_v19  ;;  %271 = vrot.lane.b32.xlu1 %v2468_v18, %s2334_s29  ;;  %v1925_v19 = vadd.f32 -1.0, %v519_v9 }
  0xd7   :  { %v2042_v21 = vpop.f32.mrf.mxu0 }
  0xd8   :  { %v2471_v22 = vpack.c.bf16 %v155_v20, %v155_v20  ;;  %v517_v20 = vrot.slane %v489_v11, %v479_v48 }
  0xd9   :  { %v159_v23 = vpop.f32.mrf.mxu0 }
  0xda   :  { %v160_v24 = vadd.f32 %v1907_v6, %v159_v23  ;;  %320 = vrot.lane.b32.xlu1 %v2471_v22, %s2334_s29 }
  0xdb   :  { %v2045_v25 = vpop.f32.mrf.mxu0 }
  0xdc   :  { %v2474_v26 = vpack.c.bf16 %v160_v24, %v160_v24  ;;  %v503_v25 = vrot.slane %v487_v62, %v479_v48 }
  0xdd   :  { %v162_v27 = vpop.f32.mrf.mxu0 }
  0xde   :  { %v163_v28 = vadd.f32 %v1907_v6, %v162_v27  ;;  %369 = vrot.lane.b32.xlu0 %v2474_v26, %s2334_s29  ;;  %v518_v6 = vcombine.high %v496_v51, %v496_v51 }
  0xdf   :  { %v2046_v29 = vpop.f32.mrf.mxu0 }
  0xe0   :  { %v2477_v30 = vpack.c.bf16 %v163_v28, %v163_v28  ;;  %v1924_v15 = vadd.f32 -1.0, %v518_v6 }
  0xe2   :  { %418 = vrot.lane.b32.xlu1 %v2477_v30, %s2334_s29  ;;  %v534_v24 = vmul.f32 1e+09, %v1924_v15  ;;  %s1899_s29 = sshll.u32 %s2337_s28, 4  ;;  %s1900_s29 = int_to_ptr.vmem [resolvable:$true] %s1899_s29 }
  0xe3   :  { %p2315_p1 = scmp.lt.s32.totalorder %s1900_s29, %s1900_s29 }
 0x140   :  { %v174_v31 = vpop.permute.xlu0 %173 }
 0x141   :  { %v179_v32 = vsel %vm99_vm1, %v174_v31, 0  ;;  %v535_v31 = vmul.f32 1e+09, %v1925_v19 }
 0x142   :  { %2048 = vmatpush3.bf16.xpose.msra.mxu1 %v179_v32  ;;  %v1927_v32 = vadd.f32 -1.0, %v517_v20 }
 0x143   :  { %2053 = vmatprep.subr.bf16.mxu1 %v2332_v1 }
 0x144   :  { %v223_v33 = vpop.permute.xlu0 %222 }
 0x145   :  { %v228_v35 = vsel %vm99_vm1, %v223_v33, 0 }
 0x148   :  { %v272_v34 = vpop.permute.xlu1 %271 }
 0x149   :  { %2050 = vmatmul.mubr.msk.bf16.vlgmr.msra.gmra.mxu1 %vm99_vm1, %v2462_v10  ;;  %v277_v38 = vsel %vm99_vm1, %v272_v34, 0 }
 0x14a   :  { %2054 = vmatpush3.bf16.xpose.msra.mxu1 %v228_v35  ;;  %2055 = vmatprep.mubr.msk.bf16.mxu1 %vm2333_vm0, %v2332_v1  ;;  %v555_v35 = vrot.slane %v534_v24, %v2523_v55 }
 0x14b   :  { %2059 = vmatprep.subr.bf16.mxu1 %v2332_v1 }
 0x14c   :  { %v321_v36 = vpop.permute.xlu1 %320 }
 0x14d   :  { %v326_v37 = vsel %vm99_vm1, %v321_v36, 0  ;;  %v1926_v36 = vadd.f32 -1.0, %v503_v25 }
 0x14e   :  { %2066 = vmatpush3.bf16.xpose.msra.mxu0 %v326_v37 }
 0x14f   :  { %2077 = vmatprep.subr.bf16.mxu0 %v2332_v1  ;;  %v536_v46 = vmul.f32 1e+09, %v1926_v36 }
 0x150   :  { %v370_v40 = vpop.permute.xlu0 %369 }
 0x151   :  { %2056 = vmatmul.mubr.msk.bf16.vlgmr.msra.gmra.mxu1 %vm99_vm1, %v2465_v14  ;;  %v375_v42 = vsel %vm99_vm1, %v370_v40, 0  ;;  %v563_v57 = vrot.slane %v536_v46, %v2523_v55 }
 0x152   :  { %2060 = vmatpush3.bf16.xpose.msra.mxu1 %v277_v38  ;;  %2061 = vmatprep.mubr.msk.bf16.mxu1 %vm2333_vm0, %v2332_v1 }
 0x153   :  { %2071 = vmatprep.subr.bf16.mxu1 %v2332_v1 }
 0x154   :  { %v419_v39 = vpop.permute.xlu1 %418 }
 0x155   :  { %v424_v41 = vsel %vm99_vm1, %v419_v39, 0  ;;  %2068 = vmatmul.mubr.msk.bf16.vlgmr.msra.gmra.mxu0 %vm99_vm1, %v2471_v22 }
 0x156   :  { %2078 = vmatpush3.bf16.xpose.msra.mxu0 %v424_v41  ;;  %2079 = vmatprep.mubr.msk.bf16.mxu0 %vm2333_vm0, %v2332_v1  ;;  %v559_v41 = vrot.slane %v535_v31, %v2523_v55 }
 0x157   :  { %2089 = vmatprep.subr.bf16.mxu0 %v2332_v1 }
 0x159   :  { %2062 = vmatmul.mubr.msk.bf16.vlgmr.msra.gmra.mxu1 %vm99_vm1, %v2468_v18 }
 0x15a   :  { %2072 = vmatpush3.bf16.xpose.msra.mxu1 %v375_v42  ;;  %2073 = vmatprep.mubr.msk.bf16.mxu1 %vm2333_vm0, %v2332_v1  ;;  %v537_v42 = vmul.f32 1e+09, %v1927_v32 }
 0x15b   :  { %2083 = vmatprep.subr.bf16.mxu1 %v2332_v1 }
 0x15c   :  { %v567_v53 = vrot.slane %v537_v42, %v2523_v55 }
 0x15d   :  { %2080 = vmatmul.mubr.msk.bf16.vlgmr.msra.gmra.mxu0 %vm99_vm1, %v2477_v30 }
 0x15e   :  { %2091 = vmatprep.mubr.msk.bf16.mxu0 %vm2333_vm0, %v2332_v1 }
 0x161   :  { %2074 = vmatmul.mubr.msk.bf16.vlgmr.msra.gmra.mxu1 %vm99_vm1, %v2474_v26 }
 0x162   :  { %2085 = vmatprep.mubr.msk.bf16.mxu1 %vm2333_vm0, %v2332_v1 }
 0x209   :  { %v215_v60 = vpop.f32.mrf.mxu1 }
 0x20a   :  { %v466_v61 = vmul.f32 0.17677669, %v215_v60 }
 0x20b   :  { %v2051_v63 = vpop.f32.mrf.mxu1 }
 0x20c   :  { %v2526_v0 = vadd.f32 %v547_v58, %v466_v61 }
 0x20d   :  { %v218_v7 = vpop.f32.mrf.mxu1 }
 0x20e   :  { %v581_v8 = vsel %vm580_vm2, %v2526_v0, -inf }
 0x20f   :  { %v2052_v12 = vpop.f32.mrf.mxu1  ;;  %582 = vmax.xlane.f32.xlu0 %v581_v8 }
 0x211   :  { %v264_v16 = vpop.f32.mrf.mxu1 }
 0x212   :  { %v467_v17 = vmul.f32 0.17677669, %v264_v16 }
 0x213   :  { %v2057_v21 = vpop.f32.mrf.mxu1 }
 0x214   :  { %v575_v23 = vadd.f32 %v551_v13, %v467_v17 }
 0x215   :  { %v267_v27 = vpop.f32.mrf.mxu1  ;;  %v362_v28 = vpop.f32.mrf.mxu0 }
 0x216   :  { %v584_v29 = vsel %vm580_vm2, %v575_v23, -inf  ;;  %v469_v39 = vmul.f32 0.17677669, %v362_v28 }
 0x217   :  { %v2058_v33 = vpop.f32.mrf.mxu1  ;;  %585 = vmax.xlane.f32.xlu1 %v584_v29  ;;  %v2069_v34 = vpop.f32.mrf.mxu0 }
 0x218   :  { %v577_v52 = vadd.f32 %v559_v41, %v469_v39 }
 0x219   :  { %v313_v37 = vpop.f32.mrf.mxu1  ;;  %v365_v38 = vpop.f32.mrf.mxu0 }
 0x21a   :  { %v468_v40 = vmul.f32 0.17677669, %v313_v37  ;;  %v590_v61 = vsel %vm580_vm2, %v577_v52, -inf }
 0x21b   :  { %v2063_v43 = vpop.f32.mrf.mxu1  ;;  %v2070_v44 = vpop.f32.mrf.mxu0 }
 0x21c   :  { %v576_v45 = vadd.f32 %v555_v35, %v468_v40 }
 0x21d   :  { %v316_v48 = vpop.f32.mrf.mxu1  ;;  %v460_v49 = vpop.f32.mrf.mxu0 }
 0x21e   :  { %v471_v50 = vmul.f32 0.17677669, %v460_v49  ;;  %v587_v51 = vsel %vm580_vm2, %v576_v45, -inf }
 0x21f   :  { %v2064_v54 = vpop.f32.mrf.mxu1  ;;  %588 = vmax.xlane.f32.xlu0 %v587_v51  ;;  %v2081_v56 = vpop.f32.mrf.mxu0 }
 0x220   :  { %v579_v62 = vadd.f32 %v567_v53, %v471_v50 }
 0x221   :  { %v411_v58 = vpop.f32.mrf.mxu1  ;;  %v463_v59 = vpop.f32.mrf.mxu0 }
 0x222   :  { %v470_v60 = vmul.f32 0.17677669, %v411_v58  ;;  %v596_v9 = vsel %vm580_vm2, %v579_v62, -inf }
 0x223   :  { %v2075_v63 = vpop.f32.mrf.mxu1  ;;  %591 = vmax.xlane.f32.xlu0 %v590_v61  ;;  %v2082_v2 = vpop.f32.mrf.mxu0 }
 0x224   :  { %v578_v6 = vadd.f32 %v563_v57, %v470_v60 }
 0x225   :  { %v414_v7 = vpop.f32.mrf.mxu1 }
 0x226   :  { %v593_v8 = vsel %vm580_vm2, %v578_v6, -inf }
 0x227   :  { %v2076_v11 = vpop.f32.mrf.mxu1  ;;  %594 = vmax.xlane.f32.xlu1 %v593_v8  ;;  %597 = vmax.xlane.f32.xlu0 %v596_v9 }
 0x238   :  { %653 = vrot.lane.b32.xlu1 %v2462_v10, %s2336_s1 }
 0x298   :  { %v583_v12 = vpop.xlane.xlu0 %582 }
 0x299   :  { %v599_v13 = vsub.f32 %v2526_v0, %v583_v12 }
 0x29b   :  { %v605_v15 = vmul.f32 1.442695, %v599_v13 }
 0x29d   :  { %2250 = vpow2.f32 %v605_v15 }
 0x2a0   :  { %v586_v16 = vpop.xlane.xlu1 %585 }
 0x2a1   :  { %v600_v17 = vsub.f32 %v575_v23, %v586_v16 }
 0x2a3   :  { %v607_v19 = vmul.f32 1.442695, %v600_v17 }
 0x2a5   :  { %2252 = vpow2.f32 %v607_v19 }
 0x2a8   :  { %v589_v20 = vpop.xlane.xlu0 %588 }
 0x2a9   :  { %v601_v34 = vsub.f32 %v576_v45, %v589_v20 }
 0x2aa   :  { %v2251_v21 = vpop.eup %2250 }
 0x2ab   :  { %v617_v24 = vsel %vm580_vm2, %v2251_v21, 0.0  ;;  %v609_v35 = vmul.f32 1.442695, %v601_v34 }
 0x2ac   :  { %618 = vadd.xlane.f32.xlu1 %v617_v24  ;;  %v592_v25 = vpop.xlane.xlu0 %591 }
 0x2ad   :  { %v602_v27 = vsub.f32 %v577_v52, %v592_v25  ;;  %v2230_v25 = vld [vmem:[%s2836_s4] sm:$0xff]  }
 0x2af   :  { %v611_v28 = vmul.f32 1.442695, %v602_v27 }
 0x2b0   :  { %v595_v29 = vpop.xlane.xlu1 %594  ;;  %v598_v38 = vpop.xlane.xlu0 %597 }
 0x2b1   :  { %2254 = vpow2.f32 %v611_v28  ;;  %v603_v36 = vsub.f32 %v578_v6, %v595_v29  ;;  %v604_v39 = vsub.f32 %v579_v62, %v598_v38 }
 0x2b2   :  { %v2253_v10 = vpop.eup %2252  ;;  %2256 = vpow2.f32 %v609_v35 }
 0x2b3   :  { %v620_v0 = vsel %vm580_vm2, %v2253_v10, 0.0  ;;  %v613_v37 = vmul.f32 1.442695, %v603_v36  ;;  %v615_v40 = vmul.f32 1.442695, %v604_v39 }
 0x2b4   :  { %v654_v31 = vpop.permute.xlu1 %653  ;;  %621 = vadd.xlane.f32.xlu0 %v620_v0 }
 0x2b5   :  { %v660_v23 = vsel %vm658_vm3, %v654_v31, 0  ;;  %2258 = vpow2.f32 %v613_v37 }
 0x2b6   :  { %2084 = vmatpush3.bf16.msra.mxu1 %v660_v23  ;;  %2260 = vpow2.f32 %v615_v40 }
 0x2b7   :  { %2095 = vmatprep.subr.bf16.mxu1 %v2332_v1 }
 0x2bd   :  { %750 = vrot.lane.b32.xlu1 %v2468_v18, %s2336_s1 }
 0x2be   :  { %v2255_v32 = vpop.eup %2254 }
 0x2bf   :  { %v626_v33 = vsel %vm580_vm2, %v2255_v32, 0.0  ;;  %v2257_v18 = vpop.eup %2256 }
 0x2c0   :  { %627 = vadd.xlane.f32.xlu0 %v626_v33  ;;  %v623_v41 = vsel %vm580_vm2, %v2257_v18, 0.0 }
 0x2c1   :  { %798 = vrot.lane.b32.xlu1 %v2471_v22, %s2336_s1 }
 0x2c2   :  { %v2259_v42 = vpop.eup %2258 }
 0x2c3   :  { %v629_v22 = vsel %vm580_vm2, %v2259_v42, 0.0  ;;  %v2556_v43 = vpop.eup %2260 }
 0x2c4   :  { %v632_v44 = vsel %vm580_vm2, %v2556_v43, 0.0 }
 0x2d6   :  { %702 = vrot.lane.b32.xlu0 %v2465_v14, %s2336_s1 }
 0x2e5   :  { %624 = vadd.xlane.f32.xlu1 %v623_v41 }
 0x2e9   :  { %630 = vadd.xlane.f32.xlu1 %v629_v22 }
 0x2f5   :  { %633 = vadd.xlane.f32.xlu0 %v632_v44 }
 0x2fa   :  { %894 = vrot.lane.b32.xlu1 %v2477_v30, %s2336_s1 }
 0x30b   :  { %846 = vrot.lane.b32.xlu0 %v2474_v26, %s2336_s1 }
 0x335   :  { %v619_v14 = vpop.xlane.xlu1 %618 }
 0x336   :  { %2262 = vrcp.f32 %v619_v14 }
 0x339   :  { %v751_v49 = vpop.permute.xlu1 %750 }
 0x33a   :  { %v756_v51 = vsel %vm658_vm3, %v751_v49, 0 }
 0x33d   :  { %v622_v45 = vpop.xlane.xlu0 %621  ;;  %v799_v56 = vpop.permute.xlu1 %798 }
 0x33e   :  { %2264 = vrcp.f32 %v622_v45  ;;  %v804_v58 = vsel %vm658_vm3, %v799_v56, 0  ;;  %v1032_v56 = vunpack.c.h.bf16 %v2431_v3 }
 0x343   :  { %v2263_v46 = vpop.eup %2262 }
 0x344   :  { %v641_v48 = vmul.f32 %v2263_v46, %v2251_v21  ;;  %v2229_v21 = vld [vmem:[%s2836_s4 + $0x8] sm:$0xff]  }
 0x346   :  { %v647_v50 = vpack.c.bf16 %v641_v48, %v641_v48 }
 0x348   :  { %2086 = vmatmul.mubr.msk.bf16.vlgmr.msra.gmra.mxu1 %vm580_vm2, %v647_v50  ;;  %v2613_v50 = vld [vmem:[%s2844_s12] sm:$0xff] }
 0x349   :  { %2096 = vmatpush3.bf16.msra.mxu1 %v756_v51  ;;  %v628_v52 = vpop.xlane.xlu0 %627  ;;  %2097 = vmatprep.mubr.msk.bf16.mxu1 %vm2333_vm0, %v2332_v1  ;;  %v952_v51 = vrot.slane %v2613_v50, %v2523_v55 }
 0x34a   :  { %2266 = vrcp.f32 %v628_v52  ;;  %2107 = vmatprep.subr.bf16.mxu1 %v2332_v1  ;;  %v1031_v52 = vunpack.c.l.bf16 %v2431_v3 }
 0x34b   :  { %v2265_v26 = vpop.eup %2264 }
 0x34c   :  { %v642_v30 = vmul.f32 %v2265_v26, %v2253_v10 }
 0x34d   :  { %v703_v53 = vpop.permute.xlu0 %702 }
 0x34e   :  { %v708_v54 = vsel %vm658_vm3, %v703_v53, 0  ;;  %v648_v57 = vpack.c.bf16 %v642_v30, %v642_v30 }
 0x34f   :  { %2090 = vmatpush3.bf16.msra.mxu0 %v708_v54 }
 0x350   :  { %2101 = vmatprep.subr.bf16.mxu0 %v2332_v1 }
 0x352   :  { %2092 = vmatmul.mubr.msk.bf16.vlgmr.msra.gmra.mxu0 %vm580_vm2, %v648_v57 }
 0x353   :  { %2102 = vmatpush3.bf16.msra.mxu0 %v804_v58  ;;  %2103 = vmatprep.mubr.msk.bf16.mxu0 %vm2333_vm0, %v2332_v1 }
 0x354   :  { %2113 = vmatprep.subr.bf16.mxu0 %v2332_v1 }
 0x357   :  { %v2267_v59 = vpop.eup %2266 }
 0x358   :  { %v644_v60 = vmul.f32 %v2267_v59, %v2255_v32 }
 0x35a   :  { %v650_v61 = vpack.c.bf16 %v644_v60, %v644_v60 }
 0x35c   :  { %2104 = vmatmul.mubr.msk.bf16.vlgmr.msra.gmra.mxu0 %vm580_vm2, %v650_v61 }
 0x35d   :  { %2115 = vmatprep.mubr.msk.bf16.mxu0 %vm2333_vm0, %v2332_v1 }
 0x36e   :  { %v625_v62 = vpop.xlane.xlu1 %624 }
 0x36f   :  { %2268 = vrcp.f32 %v625_v62 }
 0x372   :  { %v631_v63 = vpop.xlane.xlu1 %630 }
 0x373   :  { %2270 = vrcp.f32 %v631_v63  ;;  %v1033_v63 = vunpack.c.l.bf16 %v2440_v4 }
 0x376   :  { %v895_v2 = vpop.permute.xlu1 %894 }
 0x377   :  { %v900_v6 = vsel %vm658_vm3, %v895_v2, 0 }
 0x378   :  { %2114 = vmatpush3.bf16.msra.mxu0 %v900_v6 }
 0x379   :  { %2135 = vmatprep.subr.bf16.mxu0 %v2332_v1 }
 0x37c   :  { %v2269_v7 = vpop.eup %2268 }
 0x37d   :  { %v643_v8 = vmul.f32 %v2269_v7, %v2257_v18 }
 0x37e   :  { %v634_v9 = vpop.xlane.xlu0 %633 }
 0x37f   :  { %2272 = vrcp.f32 %v634_v9  ;;  %v649_v11 = vpack.c.bf16 %v643_v8, %v643_v8  ;;  %v1034_v9 = vunpack.c.h.bf16 %v2440_v4 }
 0x380   :  { %v2271_v12 = vpop.eup %2270 }
 0x381   :  { %2098 = vmatmul.mubr.msk.bf16.vlgmr.msra.gmra.mxu1 %vm580_vm2, %v649_v11  ;;  %v645_v16 = vmul.f32 %v2271_v12, %v2259_v42 }
 0x382   :  { %v847_v13 = vpop.permute.xlu0 %846  ;;  %2109 = vmatprep.mubr.msk.bf16.mxu1 %vm2333_vm0, %v2332_v1 }
 0x383   :  { %v852_v15 = vsel %vm658_vm3, %v847_v13, 0  ;;  %v651_v17 = vpack.c.bf16 %v645_v16, %v645_v16 }
 0x384   :  { %2108 = vmatpush3.bf16.msra.mxu1 %v852_v15 }
 0x385   :  { %2119 = vmatprep.subr.bf16.mxu1 %v2332_v1 }
 0x389   :  { %2110 = vmatmul.mubr.msk.bf16.vlgmr.msra.gmra.mxu1 %vm580_vm2, %v651_v17  ;;  %v1035_v17 = vunpack.c.l.bf16 %v2453_v5 }
 0x38a   :  { %2123 = vmatprep.mubr.msk.bf16.mxu1 %vm2333_vm0, %v2332_v1  ;;  %2120 = vmatpush3.bf16.msra.mxu1 %v2229_v21 }
 0x38b   :  { %2121 = vmatprep.subr.bf16.mxu1 %v2332_v1 }
 0x38c   :  { %v2273_v19 = vpop.eup %2272 }
 0x38d   :  { %v646_v20 = vmul.f32 %v2273_v19, %v2556_v43 }
 0x38e   :  { %2122 = vmatpush3.bf16.msra.mxu1 %v2230_v25  ;;  %v1036_v25 = vunpack.c.h.bf16 %v2453_v5 }
 0x38f   :  { %v652_v24 = vpack.c.bf16 %v646_v20, %v646_v20  ;;  %2151 = vmatprep.subr.bf16.mxu1 %v2332_v1 }
 0x391   :  { %2116 = vmatmul.mubr.msk.bf16.vlgmr.msra.gmra.mxu0 %vm580_vm2, %v652_v24 }
 0x392   :  { %2139 = vmatprep.mubr.msk.bf16.mxu0 %vm2333_vm0, %v2332_v1 }
 0x408   :  { %v696_v27 = vpop.f32.mrf.mxu1 }
 0x40a   :  { %v2087_v28 = vpop.f32.mrf.mxu1 }
 0x40c   :  { %v699_v29 = vpop.f32.mrf.mxu1 }
 0x40e   :  { %v2088_v10 = vpop.f32.mrf.mxu1 }
 0x412   :  { %v744_v0 = vpop.f32.mrf.mxu0 }
 0x413   :  { %v942_v31 = vpack.c.bf16 %v744_v0, %v696_v27 }
 0x414   :  { %v2093_v23 = vpop.f32.mrf.mxu0 }
 0x415   :  { %2124 = vmatmul.mubr.msk.bf16.vlgmr.msra.gmra.mxu1 %vm99_vm1, %v942_v31 }
 0x416   :  { %v747_v32 = vpop.f32.mrf.mxu0  ;;  %2127 = vmatprep.mubr.msk.bf16.mxu1 %vm2333_vm0, %v2332_v1 }
 0x418   :  { %v2094_v33 = vpop.f32.mrf.mxu0 }
 0x41c   :  { %v840_v34 = vpop.f32.mrf.mxu0 }
 0x41e   :  { %v2105_v35 = vpop.f32.mrf.mxu0 }
 0x420   :  { %v843_v36 = vpop.f32.mrf.mxu0 }
 0x422   :  { %v2106_v37 = vpop.f32.mrf.mxu0 }
 0x441   :  { %v792_v38 = vpop.f32.mrf.mxu1 }
 0x442   :  { %v943_v39 = vpack.c.bf16 %v840_v34, %v792_v38 }
 0x443   :  { %v2099_v40 = vpop.f32.mrf.mxu1 }
 0x444   :  { %2128 = vmatmul.mubr.msk.bf16.gmra.mxu1 %vm99_vm1, %v943_v39  ;;  %v2231_v39 = vld [vmem:[%s2837_s5 + $0x8] sm:$0xff]   ;;  %v2232_v40 = vld [vmem:[%s2837_s5] sm:$0xff]  }
 0x445   :  { %v795_v18 = vpop.f32.mrf.mxu1  ;;  %2131 = vmatprep.mubr.msk.bf16.mxu1 %vm2333_vm0, %v2332_v1  ;;  %2136 = vmatpush3.bf16.msra.mxu0 %v2231_v39 }
 0x446   :  { %2137 = vmatprep.subr.bf16.mxu0 %v2332_v1 }
 0x447   :  { %v2100_v41 = vpop.f32.mrf.mxu1 }
 0x449   :  { %v888_v42 = vpop.f32.mrf.mxu1  ;;  %2138 = vmatpush3.bf16.msra.mxu0 %v2232_v40 }
 0x44a   :  { %2171 = vmatprep.subr.bf16.mxu0 %v2332_v1 }
 0x44b   :  { %v2111_v22 = vpop.f32.mrf.mxu1 }
 0x44d   :  { %v891_v43 = vpop.f32.mrf.mxu1 }
 0x44f   :  { %v2112_v44 = vpop.f32.mrf.mxu1 }
 0x451   :  { %v936_v14 = vpop.f32.mrf.mxu0 }
 0x452   :  { %v944_v45 = vpack.c.bf16 %v936_v14, %v888_v42 }
 0x453   :  { %v2117_v46 = vpop.f32.mrf.mxu0 }
 0x454   :  { %2132 = vmatmul.mubr.msk.bf16.gmra.mxu1 %vm99_vm1, %v944_v45 }
 0x455   :  { %v939_v48 = vpop.f32.mrf.mxu0  ;;  %2159 = vmatprep.mubr.msk.bf16.mxu1 %vm2333_vm0, %v2332_v1 }
 0x457   :  { %v2118_v49 = vpop.f32.mrf.mxu0 }
 0x4d5   :  { %v1008_v26 = vpop.f32.mrf.mxu1 }
 0x4d6   :  { %v1009_v30 = vadd.f32 %v1008_v26, %v952_v51 }
 0x4d7   :  { %v2125_v53 = vpop.f32.mrf.mxu1 }
 0x4d8   :  { %v1037_v54 = vadd.f32 %v1031_v52, %v1009_v30 }
 0x4d9   :  { %v1011_v57 = vpop.f32.mrf.mxu1 }
 0x4da   :  { %v1012_v58 = vadd.f32 %v1011_v57, %v952_v51  ;;  %v1043_v59 = vsel %vm99_vm1, %v1037_v54, 0.0 }
 0x4db   :  { %1044 = vadd.xlane.f32.xlu0 %v1043_v59  ;;  %v2126_v60 = vpop.f32.mrf.mxu1 }
 0x4dc   :  { %v1038_v61 = vadd.f32 %v1032_v56, %v1012_v58 }
 0x4de   :  { %v1046_v62 = vsel %vm99_vm1, %v1038_v61, 0.0 }
 0x4df   :  { %1047 = vadd.xlane.f32.xlu1 %v1046_v62 }
 0x504   :  { %v1016_v2 = vpop.f32.mrf.mxu1 }
 0x505   :  { %v1017_v6 = vadd.f32 %v1016_v2, %v952_v51 }
 0x506   :  { %v2129_v7 = vpop.f32.mrf.mxu1 }
 0x507   :  { %v1039_v8 = vadd.f32 %v1033_v63, %v1017_v6  ;;  %v1124_v6 = vsub.s32 1, %v2516_v47 }
 0x508   :  { %v1019_v11 = vpop.f32.mrf.mxu1 }
 0x509   :  { %v1020_v3 = vadd.f32 %v1019_v11, %v952_v51  ;;  %v1049_v12 = vsel %vm99_vm1, %v1039_v8, 0.0  ;;  %v1134_v11 = vsub.s32 2, %v2516_v47 }
 0x50a   :  { %1050 = vadd.xlane.f32.xlu0 %v1049_v12  ;;  %v2130_v13 = vpop.f32.mrf.mxu1 }
 0x50b   :  { %v1040_v15 = vadd.f32 %v1034_v9, %v1020_v3  ;;  %v1125_v9 = vrot.slane %v2613_v50, %v1124_v6 }
 0x50d   :  { %v1052_v16 = vsel %vm99_vm1, %v1040_v15, 0.0 }
 0x50e   :  { %1053 = vadd.xlane.f32.xlu0 %v1052_v16 }
 0x514   :  { %v1024_v19 = vpop.f32.mrf.mxu1 }
 0x515   :  { %v1025_v20 = vadd.f32 %v1024_v19, %v952_v51 }
 0x516   :  { %v2133_v21 = vpop.f32.mrf.mxu1 }
 0x517   :  { %v1041_v24 = vadd.f32 %v1035_v17, %v1025_v20 }
 0x518   :  { %v1027_v27 = vpop.f32.mrf.mxu1 }
 0x519   :  { %v1028_v4 = vadd.f32 %v1027_v27, %v952_v51  ;;  %v1055_v28 = vsel %vm99_vm1, %v1041_v24, 0.0 }
 0x51a   :  { %1056 = vadd.xlane.f32.xlu1 %v1055_v28  ;;  %v2134_v29 = vpop.f32.mrf.mxu1 }
 0x51b   :  { %v1042_v10 = vadd.f32 %v1036_v25, %v1028_v4 }
 0x51d   :  { %v1058_v0 = vsel %vm99_vm1, %v1042_v10, 0.0 }
 0x51e   :  { %1059 = vadd.xlane.f32.xlu0 %v1058_v0 }
 0x564   :  { %v1045_v31 = vpop.xlane.xlu0 %1044 }
 0x565   :  { %v1062_v23 = vmul.f32 0.03125, %v1045_v31 }
 0x567   :  { %v1068_v32 = vsub.f32 %v1037_v54, %v1062_v23 }
 0x568   :  { %v1048_v33 = vpop.xlane.xlu1 %1047 }
 0x569   :  { %v1063_v34 = vmul.f32 0.03125, %v1048_v33  ;;  %v1074_v35 = vmul.f32 %v1068_v32, %v1068_v32 }
 0x56b   :  { %v1069_v36 = vsub.f32 %v1038_v61, %v1063_v34  ;;  %v1080_v37 = vsel %vm99_vm1, %v1074_v35, 0.0 }
 0x56c   :  { %1081 = vadd.xlane.f32.xlu1 %v1080_v37 }
 0x56d   :  { %v1075_v5 = vmul.f32 %v1069_v36, %v1069_v36 }
 0x56f   :  { %v1083_v38 = vsel %vm99_vm1, %v1075_v5, 0.0 }
 0x570   :  { %1084 = vadd.xlane.f32.xlu0 %v1083_v38 }
 0x593   :  { %v1051_v18 = vpop.xlane.xlu0 %1050 }
 0x594   :  { %v1064_v41 = vmul.f32 0.03125, %v1051_v18 }
 0x596   :  { %v1070_v42 = vsub.f32 %v1039_v8, %v1064_v41 }
 0x597   :  { %v1054_v22 = vpop.xlane.xlu0 %1053 }
 0x598   :  { %v1065_v43 = vmul.f32 0.03125, %v1054_v22  ;;  %v1076_v44 = vmul.f32 %v1070_v42, %v1070_v42 }
 0x59a   :  { %v1071_v14 = vsub.f32 %v1040_v15, %v1065_v43  ;;  %v1086_v45 = vsel %vm99_vm1, %v1076_v44, 0.0  ;;  %v1135_v15 = vrot.slane %v2613_v50, %v1134_v11 }
 0x59b   :  { %1087 = vadd.xlane.f32.xlu1 %v1086_v45 }
 0x59c   :  { %v1077_v46 = vmul.f32 %v1071_v14, %v1071_v14 }
 0x59e   :  { %v1089_v48 = vsel %vm99_vm1, %v1077_v46, 0.0 }
 0x59f   :  { %1090 = vadd.xlane.f32.xlu0 %v1089_v48  ;;  %v2233_v48 = vld [vmem:[%s2838_s6 + $0x18] sm:$0xff]  }
 0x5a0   :  { %2152 = vmatpush3.bf16.msra.mxu1 %v2233_v48 }
 0x5a1   :  { %2153 = vmatprep.subr.bf16.mxu1 %v2332_v1 }
 0x5a3   :  { %v1057_v49 = vpop.xlane.xlu1 %1056 }
 0x5a4   :  { %v1066_v51 = vmul.f32 0.03125, %v1057_v49  ;;  %v2234_v49 = vld [vmem:[%s2838_s6 + $0x10] sm:$0xff]  }
 0x5a5   :  { %2154 = vmatpush3.bf16.msra.mxu1 %v2234_v49 }
 0x5a6   :  { %v1072_v52 = vsub.f32 %v1041_v24, %v1066_v51  ;;  %2155 = vmatprep.subr.bf16.mxu1 %v2332_v1  ;;  %v2235_v51 = vld [vmem:[%s2838_s6 + $0x8] sm:$0xff]  }
 0x5a7   :  { %v1060_v26 = vpop.xlane.xlu0 %1059 }
 0x5a8   :  { %v1067_v30 = vmul.f32 0.03125, %v1060_v26  ;;  %v1078_v53 = vmul.f32 %v1072_v52, %v1072_v52  ;;  %v1939_v26 = vld [vmem:[%s2845_s13] ss:$0 sm:$0xff] }
 0x5a9   :  { %2156 = vmatpush3.bf16.msra.mxu1 %v2235_v51 }
 0x5aa   :  { %v1073_v54 = vsub.f32 %v1042_v10, %v1067_v30  ;;  %v1092_v56 = vsel %vm99_vm1, %v1078_v53, 0.0  ;;  %2157 = vmatprep.subr.bf16.mxu1 %v2332_v1 }
 0x5ab   :  { %1093 = vadd.xlane.f32.xlu1 %v1092_v56 }
 0x5ac   :  { %v1079_v57 = vmul.f32 %v1073_v54, %v1073_v54 }
 0x5ae   :  { %v1095_v58 = vsel %vm99_vm1, %v1079_v57, 0.0 }
 0x5af   :  { %1096 = vadd.xlane.f32.xlu0 %v1095_v58 }
 0x5f5   :  { %v1082_v59 = vpop.xlane.xlu1 %1081 }
 0x5f6   :  { %v1098_v60 = vmul.f32 0.03125, %v1082_v59 }
 0x5f8   :  { %v1104_v61 = vadd.f32 1e-12, %v1098_v60 }
 0x5f9   :  { %v1085_v62 = vpop.xlane.xlu0 %1084 }
 0x5fa   :  { %2274 = vrsqrt.f32 %v1104_v61  ;;  %v1099_v63 = vmul.f32 0.03125, %v1085_v62 }
 0x5fc   :  { %v1105_v2 = vadd.f32 1e-12, %v1099_v63 }
 0x5fe   :  { %2276 = vrsqrt.f32 %v1105_v2 }
 0x607   :  { %v2275_v7 = vpop.eup %2274 }
 0x608   :  { %v1116_v8 = vmul.f32 %v2275_v7, %v1068_v32 }
 0x60a   :  { %v1126_v13 = vmul.f32 %v1125_v9, %v1116_v8 }
 0x60b   :  { %v2277_v3 = vpop.eup %2276 }
 0x60c   :  { %v1117_v12 = vmul.f32 %v2277_v3, %v1069_v36  ;;  %v2651_v17 = vadd.f32 %v1135_v15, %v1126_v13 }
 0x60e   :  { %v1127_v16 = vmul.f32 %v1125_v9, %v1117_v12 }
 0x610   :  { %v2653_v19 = vadd.f32 %v1135_v15, %v1127_v16 }
 0x612   :  { %v1142_v20 = vpack.c.bf16 %v2653_v19, %v2651_v17 }
 0x614   :  { %2140 = vmatmul.mubr.msk.bf16.vlgmr.msra.gmra.mxu0 %vm99_vm1, %v1142_v20 }
 0x615   :  { %2143 = vmatprep.mubr.msk.bf16.mxu0 %vm2333_vm0, %v2332_v1 }
 0x624   :  { %v1088_v21 = vpop.xlane.xlu1 %1087 }
 0x625   :  { %v1100_v24 = vmul.f32 0.03125, %v1088_v21 }
 0x627   :  { %v1106_v25 = vadd.f32 1e-12, %v1100_v24 }
 0x628   :  { %v1091_v27 = vpop.xlane.xlu0 %1090 }
 0x629   :  { %2278 = vrsqrt.f32 %v1106_v25  ;;  %v1101_v4 = vmul.f32 0.03125, %v1091_v27 }
 0x62b   :  { %v1107_v28 = vadd.f32 1e-12, %v1101_v4 }
 0x62d   :  { %2280 = vrsqrt.f32 %v1107_v28 }
 0x634   :  { %v1094_v29 = vpop.xlane.xlu1 %1093 }
 0x635   :  { %v1102_v10 = vmul.f32 0.03125, %v1094_v29 }
 0x636   :  { %v2279_v0 = vpop.eup %2278 }
 0x637   :  { %v1108_v31 = vadd.f32 1e-12, %v1102_v10  ;;  %v1118_v23 = vmul.f32 %v2279_v0, %v1070_v42 }
 0x638   :  { %v1097_v32 = vpop.xlane.xlu0 %1096 }
 0x639   :  { %2282 = vrsqrt.f32 %v1108_v31  ;;  %v1103_v33 = vmul.f32 0.03125, %v1097_v32  ;;  %v1128_v37 = vmul.f32 %v1125_v9, %v1118_v23 }
 0x63a   :  { %v2281_v34 = vpop.eup %2280 }
 0x63b   :  { %v1109_v35 = vadd.f32 1e-12, %v1103_v33  ;;  %v1119_v36 = vmul.f32 %v2281_v34, %v1071_v14  ;;  %v2660_v38 = vadd.f32 %v1135_v15, %v1128_v37 }
 0x63d   :  { %2284 = vrsqrt.f32 %v1109_v35  ;;  %v1129_v5 = vmul.f32 %v1125_v9, %v1119_v36 }
 0x63f   :  { %v2662_v39 = vadd.f32 %v1135_v15, %v1129_v5 }
 0x641   :  { %v1143_v40 = vpack.c.bf16 %v2662_v39, %v2660_v38 }
 0x643   :  { %2144 = vmatmul.mubr.msk.bf16.gmra.mxu0 %vm99_vm1, %v1143_v40 }
 0x644   :  { %2147 = vmatprep.mubr.msk.bf16.mxu0 %vm2333_vm0, %v2332_v1 }
 0x646   :  { %v2283_v18 = vpop.eup %2282 }
 0x647   :  { %v1120_v41 = vmul.f32 %v2283_v18, %v1072_v52  ;;  %v2236_v52 = vld [vmem:[%s2838_s6] sm:$0xff]  }
 0x648   :  { %2158 = vmatpush3.bf16.msra.mxu1 %v2236_v52 }
 0x649   :  { %v1130_v42 = vmul.f32 %v1125_v9, %v1120_v41  ;;  %2195 = vmatprep.subr.bf16.mxu1 %v2332_v1 }
 0x64a   :  { %v2285_v22 = vpop.eup %2284 }
 0x64b   :  { %v1121_v43 = vmul.f32 %v2285_v22, %v1073_v54  ;;  %v2669_v44 = vadd.f32 %v1135_v15, %v1130_v42 }
 0x64d   :  { %v1131_v14 = vmul.f32 %v1125_v9, %v1121_v43 }
 0x64f   :  { %v2671_v45 = vadd.f32 %v1135_v15, %v1131_v14 }
 0x651   :  { %v1144_v46 = vpack.c.bf16 %v2671_v45, %v2669_v44 }
 0x653   :  { %2148 = vmatmul.mubr.msk.bf16.gmra.mxu0 %vm99_vm1, %v1144_v46 }
 0x654   :  { %2175 = vmatprep.mubr.msk.bf16.mxu0 %vm2333_vm0, %v2332_v1 }
 0x6d4   :  { %v1211_v30 = vpop.f32.mrf.mxu0 }
 0x6d5   :  { %v1212_v53 = vadd.f32 %v1939_v26, %v1211_v30 }
 0x6d6   :  { %v2141_v54 = vpop.f32.mrf.mxu0 }
 0x6d7   :  { %v1234_v56 = vmul.f32 %v1212_v53, %v1212_v53 }
 0x6d8   :  { %v1214_v57 = vpop.f32.mrf.mxu0 }
 0x6d9   :  { %v1240_v58 = vmul.f32 %v1234_v56, %v1212_v53  ;;  %v1215_v59 = vadd.f32 %v1939_v26, %v1214_v57 }
 0x6da   :  { %v2142_v60 = vpop.f32.mrf.mxu0 }
 0x6db   :  { %v1246_v61 = vmul.f32 0.044715, %v1240_v58  ;;  %v1235_v62 = vmul.f32 %v1215_v59, %v1215_v59 }
 0x6dd   :  { %v1252_v63 = vadd.f32 %v1246_v61, %v1212_v53  ;;  %v1241_v2 = vmul.f32 %v1235_v62, %v1215_v59 }
 0x6df   :  { %v1258_v7 = vmul.f32 0.7978846, %v1252_v63  ;;  %v1247_v8 = vmul.f32 0.044715, %v1241_v2 }
 0x6e1   :  { %2286 = vtanh.f32 %v1258_v7  ;;  %v1253_v9 = vadd.f32 %v1247_v8, %v1215_v59 }
 0x6e3   :  { %v1259_v3 = vmul.f32 0.7978846, %v1253_v9 }
 0x6e5   :  { %2288 = vtanh.f32 %v1259_v3 }
 0x6ee   :  { %v2287_v12 = vpop.eup %2286 }
 0x6ef   :  { %v1270_v13 = vadd.f32 1.0, %v2287_v12 }
 0x6f1   :  { %v1276_v16 = vmul.f32 0.5, %v1270_v13 }
 0x6f2   :  { %v2289_v15 = vpop.eup %2288 }
 0x6f3   :  { %v1271_v20 = vadd.f32 1.0, %v2289_v15  ;;  %v1282_v24 = vmul.f32 %v1276_v16, %v1212_v53 }
 0x6f5   :  { %v1277_v21 = vmul.f32 0.5, %v1271_v20 }
 0x6f7   :  { %v1283_v25 = vmul.f32 %v1277_v21, %v1215_v59 }
 0x6f9   :  { %v1288_v27 = vpack.c.bf16 %v1283_v25, %v1282_v24 }
 0x6fb   :  { %2160 = vmatmul.mubr.msk.bf16.vlgmr.msra.gmra.mxu1 %vm1327_vm4, %v1288_v27 }
 0x6fc   :  { %2163 = vmatprep.mubr.msk.bf16.mxu1 %vm2333_vm0, %v2332_v1 }
 0x703   :  { %v1219_v4 = vpop.f32.mrf.mxu0 }
 0x704   :  { %v1220_v28 = vadd.f32 %v1939_v26, %v1219_v4 }
 0x705   :  { %v2145_v29 = vpop.f32.mrf.mxu0 }
 0x706   :  { %v1236_v10 = vmul.f32 %v1220_v28, %v1220_v28  ;;  %v1301_v29 = vsub.s32 3, %v2516_v47 }
 0x707   :  { %v1222_v0 = vpop.f32.mrf.mxu0 }
 0x708   :  { %v1242_v31 = vmul.f32 %v1236_v10, %v1220_v28  ;;  %v1223_v23 = vadd.f32 %v1939_v26, %v1222_v0  ;;  %v1302_v10 = vrot.slane %v2613_v50, %v1301_v29  ;;  %v2237_v29 = vld [vmem:[%s2839_s7 + $0x18] sm:$0xff]  }
 0x709   :  { %v2146_v32 = vpop.f32.mrf.mxu0  ;;  %2172 = vmatpush3.bf16.msra.mxu0 %v2237_v29 }
 0x70a   :  { %v1248_v33 = vmul.f32 0.044715, %v1242_v31  ;;  %v1237_v34 = vmul.f32 %v1223_v23, %v1223_v23  ;;  %2173 = vmatprep.subr.bf16.mxu0 %v2332_v1 }
 0x70c   :  { %v1254_v35 = vadd.f32 %v1248_v33, %v1220_v28  ;;  %v1243_v36 = vmul.f32 %v1237_v34, %v1223_v23 }
 0x70e   :  { %v1260_v37 = vmul.f32 0.7978846, %v1254_v35  ;;  %v1249_v5 = vmul.f32 0.044715, %v1243_v36 }
 0x710   :  { %2290 = vtanh.f32 %v1260_v37  ;;  %v1255_v40 = vadd.f32 %v1249_v5, %v1223_v23 }
 0x712   :  { %v1261_v18 = vmul.f32 0.7978846, %v1255_v40 }
 0x713   :  { %v1227_v41 = vpop.f32.mrf.mxu0 }
 0x714   :  { %2292 = vtanh.f32 %v1261_v18  ;;  %v1228_v42 = vadd.f32 %v1939_v26, %v1227_v41 }
 0x715   :  { %v2149_v22 = vpop.f32.mrf.mxu0 }
 0x716   :  { %v1238_v43 = vmul.f32 %v1228_v42, %v1228_v42 }
 0x717   :  { %v1230_v14 = vpop.f32.mrf.mxu0 }
 0x718   :  { %v1244_v46 = vmul.f32 %v1238_v43, %v1228_v42  ;;  %v1231_v48 = vadd.f32 %v1939_v26, %v1230_v14 }
 0x719   :  { %v2150_v49 = vpop.f32.mrf.mxu0 }
 0x71a   :  { %v1250_v51 = vmul.f32 0.044715, %v1244_v46  ;;  %v1239_v52 = vmul.f32 %v1231_v48, %v1231_v48 }
 0x71c   :  { %v1256_v30 = vadd.f32 %v1250_v51, %v1228_v42  ;;  %v1245_v53 = vmul.f32 %v1239_v52, %v1231_v48 }
 0x71d   :  { %v2291_v54 = vpop.eup %2290 }
 0x71e   :  { %v1272_v56 = vadd.f32 1.0, %v2291_v54  ;;  %v1262_v57 = vmul.f32 0.7978846, %v1256_v30  ;;  %v1251_v58 = vmul.f32 0.044715, %v1245_v53 }
 0x720   :  { %2294 = vtanh.f32 %v1262_v57  ;;  %v1257_v59 = vadd.f32 %v1251_v58, %v1231_v48  ;;  %v1278_v61 = vmul.f32 0.5, %v1272_v56 }
 0x721   :  { %v2293_v60 = vpop.eup %2292 }
 0x722   :  { %v1273_v62 = vadd.f32 1.0, %v2293_v60  ;;  %v1263_v63 = vmul.f32 0.7978846, %v1257_v59  ;;  %v1284_v7 = vmul.f32 %v1278_v61, %v1220_v28 }
 0x724   :  { %v1279_v2 = vmul.f32 0.5, %v1273_v62  ;;  %2296 = vtanh.f32 %v1263_v63 }
 0x726   :  { %v1285_v8 = vmul.f32 %v1279_v2, %v1223_v23 }
 0x728   :  { %v1289_v26 = vpack.c.bf16 %v1285_v8, %v1284_v7 }
 0x72a   :  { %2164 = vmatmul.mubr.msk.bf16.gmra.mxu1 %vm1327_vm4, %v1289_v26 }
 0x72b   :  { %2167 = vmatprep.mubr.msk.bf16.mxu1 %vm2333_vm0, %v2332_v1 }
 0x72d   :  { %v2295_v9 = vpop.eup %2294 }
 0x72e   :  { %v1274_v3 = vadd.f32 1.0, %v2295_v9 }
 0x730   :  { %v1280_v13 = vmul.f32 0.5, %v1274_v3 }
 0x731   :  { %v2297_v12 = vpop.eup %2296 }
 0x732   :  { %v1275_v15 = vadd.f32 1.0, %v2297_v12  ;;  %v1286_v20 = vmul.f32 %v1280_v13, %v1228_v42 }
 0x734   :  { %v1281_v16 = vmul.f32 0.5, %v1275_v15 }
 0x736   :  { %v1287_v21 = vmul.f32 %v1281_v16, %v1231_v48 }
 0x738   :  { %v1290_v24 = vpack.c.bf16 %v1287_v21, %v1286_v20 }
 0x73a   :  { %2168 = vmatmul.mubr.msk.bf16.gmra.mxu1 %vm1327_vm4, %v1290_v24 }
 0x73b   :  { %2197 = vmatprep.mubr.msk.bf16.mxu1 %vm2333_vm0, %v2332_v1 }
 0x7bb   :  { %v1371_v25 = vpop.f32.mrf.mxu1 }
 0x7bc   :  { %v1372_v35 = vadd.f32 %v1371_v25, %v1302_v10 }
 0x7bd   :  { %v2161_v27 = vpop.f32.mrf.mxu1 }
 0x7be   :  { %v1394_v22 = vadd.f32 %v1372_v35, %v2651_v17 }
 0x7bf   :  { %v1374_v4 = vpop.f32.mrf.mxu1 }
 0x7c0   :  { %v1375_v31 = vadd.f32 %v1374_v4, %v1302_v10 }
 0x7c1   :  { %v2162_v28 = vpop.f32.mrf.mxu1 }
 0x7c2   :  { %v1395_v5 = vadd.f32 %v1375_v31, %v2653_v19 }
 0x7c4   :  { %v1403_v41 = vsel %vm99_vm1, %v1395_v5, 0.0 }
 0x7ea   :  { %v1379_v0 = vpop.f32.mrf.mxu1 }
 0x7eb   :  { %v1380_v23 = vadd.f32 %v1379_v0, %v1302_v10 }
 0x7ec   :  { %v2165_v32 = vpop.f32.mrf.mxu1 }
 0x7ed   :  { %v1396_v33 = vadd.f32 %v1380_v23, %v2660_v38  ;;  %v1400_v38 = vsel %vm99_vm1, %v1394_v22, 0.0 }
 0x7ee   :  { %v1382_v34 = vpop.f32.mrf.mxu1 }
 0x7ef   :  { %v1383_v36 = vadd.f32 %v1382_v34, %v1302_v10  ;;  %v1406_v37 = vsel %vm99_vm1, %v1396_v33, 0.0 }
 0x7f0   :  { %1407 = vadd.xlane.f32.xlu1 %v1406_v37  ;;  %v2166_v40 = vpop.f32.mrf.mxu1 }
 0x7f1   :  { %v1397_v18 = vadd.f32 %v1383_v36, %v2662_v39 }
 0x7f3   :  { %v1409_v42 = vsel %vm99_vm1, %v1397_v18, 0.0 }
 0x7f4   :  { %1404 = vadd.xlane.f32.xlu1 %v1403_v41  ;;  %1410 = vadd.xlane.f32.xlu0 %v1409_v42  ;;  %v1480_v41 = vsub.s32 4, %v2516_v47  ;;  %v1490_v42 = vsub.s32 5, %v2516_v47 }
 0x7f8   :  { %1401 = vadd.xlane.f32.xlu0 %v1400_v38  ;;  %v1481_v38 = vrot.slane %v2613_v50, %v1480_v41 }
 0x7fa   :  { %v1387_v43 = vpop.f32.mrf.mxu1 }
 0x7fb   :  { %v1388_v14 = vadd.f32 %v1387_v43, %v1302_v10 }
 0x7fc   :  { %v2169_v46 = vpop.f32.mrf.mxu1 }
 0x7fd   :  { %v1398_v19 = vadd.f32 %v1388_v14, %v2669_v44  ;;  %v1491_v46 = vrot.slane %v2613_v50, %v1490_v42  ;;  %v1718_v42 = vld [vmem:[%s2841_s9] sm:$0x3] }
 0x7fe   :  { %v1390_v48 = vpop.f32.mrf.mxu1 }
 0x7ff   :  { %v1391_v49 = vadd.f32 %v1390_v48, %v1302_v10  ;;  %v1412_v39 = vsel %vm99_vm1, %v1398_v19, 0.0  ;;  %v2238_v10 = vld [vmem:[%s2839_s7 + $0x10] sm:$0xff]  }
 0x800   :  { %1413 = vadd.xlane.f32.xlu1 %v1412_v39  ;;  %v2170_v51 = vpop.f32.mrf.mxu1  ;;  %2174 = vmatpush3.bf16.msra.mxu0 %v2238_v10 }
 0x801   :  { %v1399_v52 = vadd.f32 %v1391_v49, %v2671_v45  ;;  %2179 = vmatprep.subr.bf16.mxu0 %v2332_v1 }
 0x803   :  { %v1415_v17 = vsel %vm99_vm1, %v1399_v52, 0.0 }
 0x804   :  { %1416 = vadd.xlane.f32.xlu0 %v1415_v17 }
 0x879   :  { %v1408_v30 = vpop.xlane.xlu1 %1407 }
 0x87a   :  { %v1420_v53 = vmul.f32 0.03125, %v1408_v30 }
 0x87c   :  { %v2720_v54 = vsub.f32 %v1396_v33, %v1420_v53 }
 0x87d   :  { %v1405_v56 = vpop.xlane.xlu1 %1404  ;;  %v1411_v57 = vpop.xlane.xlu0 %1410 }
 0x87e   :  { %v1419_v58 = vmul.f32 0.03125, %v1405_v56  ;;  %v1421_v59 = vmul.f32 0.03125, %v1411_v57  ;;  %v1432_v44 = vmul.f32 %v2720_v54, %v2720_v54 }
 0x880   :  { %v2724_v60 = vsub.f32 %v1395_v5, %v1419_v58  ;;  %v2726_v61 = vsub.f32 %v1397_v18, %v1421_v59  ;;  %v1442_v45 = vsel %vm99_vm1, %v1432_v44, 0.0 }
 0x881   :  { %v1402_v62 = vpop.xlane.xlu0 %1401  ;;  %1443 = vadd.xlane.f32.xlu1 %v1442_v45 }
 0x882   :  { %v1418_v63 = vmul.f32 0.03125, %v1402_v62  ;;  %v1431_v2 = vmul.f32 %v2724_v60, %v2724_v60  ;;  %v1433_v7 = vmul.f32 %v2726_v61, %v2726_v61 }
 0x884   :  { %v2733_v8 = vsub.f32 %v1394_v22, %v1418_v63  ;;  %v1439_v26 = vsel %vm99_vm1, %v1431_v2, 0.0  ;;  %v1445_v9 = vsel %vm99_vm1, %v1433_v7, 0.0 }
 0x885   :  { %1440 = vadd.xlane.f32.xlu1 %v1439_v26  ;;  %1446 = vadd.xlane.f32.xlu0 %v1445_v9 }
 0x886   :  { %v1430_v3 = vmul.f32 %v2733_v8, %v2733_v8 }
 0x888   :  { %v1436_v12 = vsel %vm99_vm1, %v1430_v3, 0.0 }
 0x889   :  { %v1414_v13 = vpop.xlane.xlu1 %1413  ;;  %1437 = vadd.xlane.f32.xlu0 %v1436_v12 }
 0x88a   :  { %v1422_v15 = vmul.f32 0.03125, %v1414_v13 }
 0x88c   :  { %v2740_v16 = vsub.f32 %v1398_v19, %v1422_v15  ;;  %v2239_v15 = vld [vmem:[%s2839_s7 + $0x8] sm:$0xff]  }
 0x88d   :  { %v1417_v20 = vpop.xlane.xlu0 %1416 }
 0x88e   :  { %v1423_v21 = vmul.f32 0.03125, %v1417_v20  ;;  %v1434_v24 = vmul.f32 %v2740_v16, %v2740_v16 }
 0x890   :  { %v2744_v25 = vsub.f32 %v1399_v52, %v1423_v21  ;;  %v1448_v27 = vsel %vm99_vm1, %v1434_v24, 0.0 }
 0x891   :  { %1449 = vadd.xlane.f32.xlu1 %v1448_v27 }
 0x892   :  { %v1435_v4 = vmul.f32 %v2744_v25, %v2744_v25 }
 0x894   :  { %v1451_v28 = vsel %vm99_vm1, %v1435_v4, 0.0 }
 0x895   :  { %1452 = vadd.xlane.f32.xlu0 %v1451_v28  ;;  %v2240_v28 = vld [vmem:[%s2839_s7] sm:$0xff]  }
 0x90a   :  { %v1444_v0 = vpop.xlane.xlu1 %1443 }
 0x90b   :  { %v1456_v31 = vmul.f32 0.03125, %v1444_v0 }
 0x90d   :  { %v1462_v23 = vadd.f32 1e-12, %v1456_v31 }
 0x90e   :  { %v1441_v32 = vpop.xlane.xlu1 %1440  ;;  %v1447_v33 = vpop.xlane.xlu0 %1446 }
 0x90f   :  { %2298 = vrsqrt.f32 %v1462_v23  ;;  %v1455_v34 = vmul.f32 0.03125, %v1441_v32  ;;  %v1457_v35 = vmul.f32 0.03125, %v1447_v33  ;;  %v2241_v32 = vld [vmem:[%s2839_s7 + $0x28] sm:$0xff]  }
 0x911   :  { %v1461_v36 = vadd.f32 1e-12, %v1455_v34  ;;  %v1463_v37 = vadd.f32 1e-12, %v1457_v35 }
 0x912   :  { %v1438_v5 = vpop.xlane.xlu0 %1437 }
 0x913   :  { %2300 = vrsqrt.f32 %v1461_v36  ;;  %v1454_v40 = vmul.f32 0.03125, %v1438_v5  ;;  %v2242_v36 = vld [vmem:[%s2839_s7 + $0x20] sm:$0xff]  }
 0x914   :  { %2302 = vrsqrt.f32 %v1463_v37 }
 0x915   :  { %v1460_v18 = vadd.f32 1e-12, %v1454_v40 }
 0x917   :  { %2304 = vrsqrt.f32 %v1460_v18 }
 0x91a   :  { %v1450_v22 = vpop.xlane.xlu1 %1449 }
 0x91b   :  { %v1458_v43 = vmul.f32 0.03125, %v1450_v22  ;;  %v1725_v22 = vsel %vm1723_vm6, %v1718_v42, 0 }
 0x91c   :  { %v2299_v14 = vpop.eup %2298  ;;  %2196 = vmatpush3.bf16.msra.mxu1 %v1725_v22 }
 0x91d   :  { %v1474_v19 = vmul.f32 %v2299_v14, %v2720_v54  ;;  %v1464_v48 = vadd.f32 1e-12, %v1458_v43  ;;  %2209 = vmatprep.subr.bf16.mxu1 %v2332_v1  ;;  %v1716_v43 = vld [vmem:[%s2834_s2] sm:$0x3] }
 0x91e   :  { %v1453_v49 = vpop.xlane.xlu0 %1452  ;;  %v1717_v14 = vpack.c.bf16 %v1716_v43, %v1716_v43 }
 0x91f   :  { %v1484_v39 = vmul.f32 %v1481_v38, %v1474_v19  ;;  %2306 = vrsqrt.f32 %v1464_v48  ;;  %v1459_v51 = vmul.f32 0.03125, %v1453_v49 }
 0x920   :  { %v2301_v52 = vpop.eup %2300  ;;  %2198 = vmatmul.mubr.msk.bf16.vlgmr.msra.gmra.mxu1 %vm1719_vm7, %v1717_v14 }
 0x921   :  { %v2303_v17 = vpop.eup %2302  ;;  %v1494_v30 = vadd.f32 %v1491_v46, %v1484_v39  ;;  %v1473_v53 = vmul.f32 %v2301_v52, %v2724_v60  ;;  %v1465_v56 = vadd.f32 1e-12, %v1459_v51  ;;  %2213 = vmatprep.mubr.msk.bf16.mxu1 %vm2333_vm0, %v2332_v1 }
 0x922   :  { %v1475_v57 = vmul.f32 %v2303_v17, %v2726_v61 }
 0x923   :  { %v1504_v58 = vpack.c.bf16 %v1494_v30, %v1494_v30  ;;  %v1483_v59 = vmul.f32 %v1481_v38, %v1473_v53  ;;  %2308 = vrsqrt.f32 %v1465_v56  ;;  %v60_v30 = vld [vmem:[%s2846_s14] sm:$0xf] }
 0x924   :  { %v2305_v44 = vpop.eup %2304  ;;  %v1485_v50 = vmul.f32 %v1481_v38, %v1475_v57  ;;  %v1708_v57 = vrot.slane %v60_v30, %v2523_v55  ;;  %v2246_v55 = vld [vmem:[%s2842_s10] sm:$0xff]  }
 0x925   :  { %v1472_v54 = vmul.f32 %v2305_v44, %v2733_v8  ;;  %v1493_v45 = vadd.f32 %v1491_v46, %v1483_v59  ;;  %v1512_v62 = vunpack.c.l.b16 %v1504_v58 }
 0x926   :  { %v1495_v63 = vadd.f32 %v1491_v46, %v1485_v50 }
 0x927   :  { %v1482_v2 = vmul.f32 %v1481_v38, %v1472_v54  ;;  %v1499_v26 = vpack.c.bf16 %v1493_v45, %v1493_v45  ;;  %v1514_v3 = vrot.slane %v1512_v62, 1 }
 0x928   :  { %v1505_v7 = vpack.c.bf16 %v1495_v63, %v1495_v63 }
 0x929   :  { %v1492_v9 = vadd.f32 %v1491_v46, %v1482_v2  ;;  %v1576_v20 = vunpack.c.l.b16 %v1499_v26 }
 0x92a   :  { %v1513_v60 = vunpack.c.l.b16 %v1505_v7 }
 0x92b   :  { %v1498_v12 = vpack.c.bf16 %v1492_v9, %v1492_v9  ;;  %v1577_v29 = vrot.slane %v1576_v20, 7  ;;  %v2245_v9 = vld [vmem:[%s2842_s10 + $0x8] sm:$0xff]   ;;  %s2310_s10 = scalar_lea.vmem %s1900_s29, 32 }
 0x92c   :  { %v2307_v13 = vpop.eup %2306  ;;  %v1516_v61 = vsel %vm1515_vm5, %v1513_v60, %v1514_v3  ;;  %2210 = vmatpush3.bf16.msra.mxu1 %v2245_v9  ;;  %v1825_v60 = vrot.slane %v60_v30, %v1124_v6  ;;  %p2311_p0 = scmp.ne.s32.totalorder %s1900_s29, %s2310_s10  ;;  %p2316_p2 = scmp.lt.s32.totalorder %s2310_s10, %s2310_s10 }
 0x92d   :  { %v1476_v8 = vmul.f32 %v2307_v13, %v2740_v16  ;;  %v1517_v21 = vpack.c.b16 %v1516_v61, %v1516_v61  ;;  %v1575_v24 = vunpack.c.l.b16 %v1498_v12  ;;  %2211 = vmatprep.subr.bf16.mxu1 %v2332_v1 }
 0x92e   :  { %p2317_p3 = por %p2316_p2, %p2315_p1 }
 0x92f   :  { %v1486_v27 = vmul.f32 %v1481_v38, %v1476_v8  ;;  %2176 = vmatmul.mubr.msk.bf16.vlgmr.msra.gmra.mxu0 %vm99_vm1, %v1517_v21  ;;  %v1578_v0 = vsel %vm1515_vm5, %v1577_v29, %v1575_v24 }
 0x930   :  { %v2309_v4 = vpop.eup %2308  ;;  %2180 = vmatpush3.bf16.msra.mxu0 %v2239_v15  ;;  %2183 = vmatprep.mubr.msk.bf16.mxu0 %vm2333_vm0, %v2332_v1  ;;  %v1579_v33 = vpack.c.b16 %v1578_v0, %v1578_v0  ;;  %p2318_p4 = pnand %p2317_p3, %p2311_p0 }
 0x931   :  { %v1477_v10 = vmul.f32 %v2309_v4, %v2744_v25  ;;  %2181 = vmatprep.subr.bf16.mxu0 %v2332_v1  ;;  %v1496_v16 = vadd.f32 %v1491_v46, %v1486_v27  ;;  %2212 = vmatpush3.bf16.msra.mxu1 %v2246_v55 }
 0x933   :  { %v1487_v31 = vmul.f32 %v1481_v38, %v1477_v10  ;;  %v1635_v23 = vpack.c.bf16 %v1496_v16, %v1496_v16  ;;  %v2243_v38 = vld [vmem:[%s2840_s8 + $0x8] sm:$0xff]  }
 0x934   :  { %2182 = vmatpush3.bf16.msra.mxu0 %v2240_v28 }
 0x935   :  { %2187 = vmatprep.subr.bf16.mxu0 %v2332_v1  ;;  %v1497_v34 = vadd.f32 %v1491_v46, %v1487_v31  ;;  %v1643_v25 = vunpack.c.l.b16 %v1635_v23  ;;  %v2244_v46 = vld [vmem:[%s2840_s8] sm:$0xff]  }
 0x937   :  { %2184 = vmatmul.mubr.msk.bf16.vlgmr.msra.gmra.mxu0 %vm99_vm1, %v1579_v33  ;;  %v1636_v35 = vpack.c.bf16 %v1497_v34, %v1497_v34  ;;  %v1645_v5 = vrot.slane %v1643_v25, 2 }
 0x938   :  { %2188 = vmatpush3.bf16.msra.mxu0 %v2241_v32  ;;  %2191 = vmatprep.mubr.msk.bf16.mxu0 %vm2333_vm0, %v2332_v1 }
 0x939   :  { %2189 = vmatprep.subr.bf16.mxu0 %v2332_v1  ;;  %v1644_v37 = vunpack.c.l.b16 %v1636_v35 }
 0x93b   :  { %v1646_v40 = vrot.slane %v1644_v37, 1 }
 0x93c   :  { %2190 = vmatpush3.bf16.msra.mxu0 %v2242_v36 }
 0x93d   :  { %v1647_v18 = vsel %vm1515_vm5, %v1646_v40, %v1645_v5  ;;  %2201 = vmatprep.subr.bf16.mxu0 %v2332_v1 }
 0x93e   :  { %v1648_v41 = vpack.c.b16 %v1647_v18, %v1647_v18 }
 0x940   :  { %2192 = vmatmul.mubr.msk.bf16.vlgmr.msra.gmra.mxu0 %vm99_vm1, %v1648_v41 }
 0x941   :  { %2205 = vmatprep.mubr.msk.bf16.mxu0 %vm2333_vm0, %v2332_v1  ;;  %2202 = vmatpush3.bf16.msra.mxu0 %v2243_v38 }
 0x942   :  { %2203 = vmatprep.subr.bf16.mxu0 %v2332_v1  ;;  %v1836_v1 = vrot.slane %v60_v30, %v1134_v11 }
 0x945   :  { %2204 = vmatpush3.bf16.msra.mxu0 %v2244_v46 }
 0x9e0   :  { %v1761_v2 = vpop.f32.mrf.mxu1 }
 0x9e2   :  { %v2199_v7 = vpop.f32.mrf.mxu1 }
 0x9e4   :  { %v1764_v26 = vpop.f32.mrf.mxu1 }
 0x9e6   :  { %v2200_v3 = vpop.f32.mrf.mxu1 }
 0x9ef   :  { %v1567_v19 = vpop.f32.mrf.mxu0 }
 0x9f1   :  { %v2177_v48 = vpop.f32.mrf.mxu0 }
 0x9f3   :  { %v1570_v49 = vpop.f32.mrf.mxu0 }
 0x9f5   :  { %v2178_v39 = vpop.f32.mrf.mxu0 }
 0x9f7   :  { %v1629_v51 = vpop.f32.mrf.mxu0 }
 0x9f8   :  { %v1630_v56 = vadd.f32 %v1629_v51, %v1567_v19 }
 0x9f9   :  { %v2185_v52 = vpop.f32.mrf.mxu0 }
 0x9fb   :  { %v1632_v17 = vpop.f32.mrf.mxu0 }
 0x9fd   :  { %v2186_v53 = vpop.f32.mrf.mxu0 }
 0xa00   :  { %v1698_v58 = vpop.f32.mrf.mxu0 }
 0xa01   :  { %v1704_v59 = vadd.f32 %v1698_v58, %v1630_v56 }
 0xa02   :  { %v2193_v44 = vpop.f32.mrf.mxu0 }
 0xa03   :  { %v1709_v50 = vadd.f32 %v1708_v57, %v1704_v59 }
 0xa04   :  { %v1701_v54 = vpop.f32.mrf.mxu0 }
 0xa05   :  { %v1710_v45 = vmax.f32 %v1709_v50, 0.0 }
 0xa06   :  { %v2194_v62 = vpop.f32.mrf.mxu0 }
 0xa07   :  { %v1711_v63 = vpack.c.bf16 %v1710_v45, %v1710_v45 }
 0xa09   :  { %2206 = vmatmul.mubr.msk.bf16.vlgmr.msra.gmra.mxu0 %vm99_vm1, %v1711_v63 }
 0xac9   :  { %v1816_v12 = vpop.f32.mrf.mxu0 }
 0xaca   :  { %v1817_v13 = vadd.f32 %v1816_v12, %v1761_v2 }
 0xacb   :  { %v2207_v61 = vpop.f32.mrf.mxu0 }
 0xacc   :  { %v1826_v15 = vadd.f32 %v1825_v60, %v1817_v13 }
 0xacd   :  { %v1819_v20 = vpop.f32.mrf.mxu0 }
 0xace   :  { %v1827_v8 = vmax.f32 %v1826_v15, 0.0 }
 0xacf   :  { %v2208_v21 = vpop.f32.mrf.mxu0 }
 0xad0   :  { %v1828_v24 = vpack.c.bf16 %v1827_v8, %v1827_v8 }
 0xad2   :  { %2214 = vmatmul.mubr.msk.bf16.vlgmr.msra.gmra.mxu1 %vm99_vm1, %v1828_v24 }
 0xb92   :  { %v1886_v27 = vpop.f32.mrf.mxu1 }
 0xb93   :  { %v1887_v4 = vadd.f32 %v1886_v27, %v1836_v1 }
 0xb94   :  { %v2215_v28 = vpop.f32.mrf.mxu1 }
 0xb95   :  { %1892 = vst [vmem:[#allocation2] sm:$0x3] %v1887_v4 }
 0xb96   :  { %v1889_v6 = vpop.f32.mrf.mxu1 }
 0xb97   :  { %2321 = shalt.err (!%p2318_p4)
}
 0xb98   :  { %1902 = dma.vmem_to_hbm [thread:$0]  %s1900_s29, 32, %s2847_s15, [#allocation3]   ;;  %v2216_v47 = vpop.f32.mrf.mxu1 }
 0xb99   :  { %2330 = dma.done.wait [#allocation3], 32  }
 0xb9a   :  { %2331 = vsyncadd [#allocation3], 4294967264 }
 0xb9b   :  { %1906 = vsyncpa [#allocation3], 1 }

</bundles_post_ra>
